<compile_context>
chip_gen: v6e
topology: v6e:2x2x1
jax: 0.10.0
libtpu: 0.0.40
codegen_flags: <defaults>
</compile_context>

<pallas_src>
import functools

import jax
import jax.numpy as jnp
from jax import lax
from jax.experimental import pallas as pl
from jax.experimental.pallas import tpu as pltpu


def _round_up(x, m):
    return (x + m - 1) // m * m


def _sepconv_kernel(x_hbm, wdw_ref, wpw_ref, o_ref, xbuf, sem, *,
                    KH, KW, stride, dilation, tile_h, Wo, in_rows, n_htiles):
    """One (batch, row-tile) step of the fused depthwise + pointwise conv.

    x_hbm  : (B, Hp, Wp, Cin_p)      padded input, left in HBM (pl.ANY)
    wdw_ref: (KH, KW, Cin_p)         depthwise weights (VMEM)
    wpw_ref: (Cin_p, Cout_p)         pointwise weights (VMEM)
    o_ref  : (1, tile_h*Wo, Cout_p)  output tile (VMEM)
    xbuf   : (2, in_rows, Wp, Cin_p) double-buffered input rows (VMEM scratch)
    sem    : (2,) DMA semaphores
    """
    b = pl.program_id(0)
    t = pl.program_id(1)

    row_step = tile_h * stride

    def copy_for(ti, slot):
        row0 = pl.multiple_of(ti * row_step, row_step)
        return pltpu.make_async_copy(
            x_hbm.at[b, pl.ds(row0, in_rows)], xbuf.at[slot], sem.at[slot])

    # Prime the pipeline at the start of each batch's row sweep (no DMA carries
    # across batches, so this is megacore-safe with B marked "parallel").
    @pl.when(t == 0)
    def _():
        copy_for(0, 0).start()

    slot = t % 2
    copy_for(t, slot).wait()

    # Prefetch the next row tile (with its halo) while computing this one.
    @pl.when(t + 1 < n_htiles)
    def _():
        copy_for(t + 1, (t + 1) % 2).start()

    # ---- depthwise conv (VPU) ---------------------------------------------
    # Casts hoisted out of the tap loop (JAX does not CSE convert/broadcast).
    xf = xbuf[slot].astype(jnp.float32)        # (in_rows, Wp, Cin_p)
    wf = wdw_ref[...].astype(jnp.float32)      # (KH, KW, Cin_p)
    cin = xf.shape[-1]

    acc = jnp.zeros((tile_h, Wo, cin), jnp.float32)
    for kh in range(KH):
        for kw in range(KW):
            patch = lax.slice(
                xf,
                (kh * dilation, kw * dilation, 0),
                (kh * dilation + (tile_h - 1) * stride + 1,
                 kw * dilation + (Wo - 1) * stride + 1,
                 cin),
                (stride, stride, 1))
            acc = acc + patch * wf[kh, kw, :]
    # TODO(synk): for stride=2 layers, pre-split W into even/odd phases so the
    # sublane slice above stays unit-stride (avoids XLU shuffles per tap).

    # ---- pointwise 1x1 conv (MXU) -----------------------------------------
    acc2d = acc.reshape(tile_h * Wo, cin)      # tile_h*Wo is 8-aligned by construction
    wp = wpw_ref[...]
    if wp.dtype == jnp.bfloat16:
        # bf16 operands straight to the MXU, f32 accumulate.
        out = jnp.dot(acc2d.astype(jnp.bfloat16), wp,
                      preferred_element_type=jnp.float32)
    else:
        out = jnp.dot(acc2d, wp.astype(jnp.float32),
                      preferred_element_type=jnp.float32)
    o_ref[0] = out.astype(o_ref.dtype)


def separable_conv2d(x_nchw, w_dw, w_pw, *, stride=1, padding=0, dilation=1,
                     max_tile_h=None):
    """x_nchw: (B, Cin, H, W); w_dw: (Cin, 1, KH, KW); w_pw: (Cout, Cin, 1, 1)."""
    B, Cin, H, W = x_nchw.shape
    Cout = w_pw.shape[0]
    KH, KW = int(w_dw.shape[2]), int(w_dw.shape[3])
    Ho = (H + 2 * padding - dilation * (KH - 1) - 1) // stride + 1
    Wo = (W + 2 * padding - dilation * (KW - 1) - 1) // stride + 1

    # Lane-dense channel padding (multiples of 128): unmasked stores and a
    # well-shaped MXU contraction.  Near no-op for Xception-size channel counts.
    Cin_p = _round_up(Cin, 128)
    Cout_p = _round_up(Cout, 128)

    # Glue: NCHW -> NHWC + spatial & channel zero-pad.
    # TODO(synk): in a full ported model keep activations NHWC between layers to
    # avoid these extra HBM transpose/pad passes around every conv.
    x = jnp.transpose(x_nchw, (0, 2, 3, 1))
    xp = jnp.pad(x, ((0, 0), (padding, padding), (padding, padding),
                     (0, Cin_p - Cin)))
    Hp, Wp = int(xp.shape[1]), int(xp.shape[2])

    wdw = jnp.transpose(w_dw[:, 0, :, :], (1, 2, 0))          # (KH, KW, Cin)
    wdw = jnp.pad(wdw, ((0, 0), (0, 0), (0, Cin_p - Cin)))
    wpw = jnp.transpose(w_pw[:, :, 0, 0], (1, 0))             # (Cin, Cout)
    wpw = jnp.pad(wpw, ((0, Cin_p - Cin), (0, Cout_p - Cout)))

    in_itm = xp.dtype.itemsize
    out_itm = jnp.dtype(x_nchw.dtype).itemsize
    w_bytes = (wdw.size + 2 * wpw.size) * in_itm   # resident weights (pw maybe 2-buf)

    def _tile_bytes(d):
        rows = (d - 1) * stride + dilation * (KH - 1) + 1
        return (2 * rows * Wp * Cin_p * in_itm          # double-buffered input rows
                + 2 * d * Wo * Cout_p * out_itm         # double-buffered output tile
                + d * Wo * Cin_p * 4                    # f32 accumulator
                + w_bytes)

    # VMEM budget sized for the smallest generation (v7x: 64 MiB physical),
    # leaving headroom for weights, temporaries and the output pipeline.
    budget = 24 * 1024 * 1024
    cap = max_tile_h if max_tile_h is not None else Ho
    tile_h = Ho  # fallback: full-height block (block == full dim -> always legal)
    for d in range(min(cap, Ho), 0, -1):
        if Ho % d == 0 and (d * Wo) % 8 == 0 and _tile_bytes(d) <= budget:
            tile_h = d
            break
    n_ht = Ho // tile_h
    in_rows = (tile_h - 1) * stride + dilation * (KH - 1) + 1

    kernel = functools.partial(
        _sepconv_kernel, KH=KH, KW=KW, stride=stride, dilation=dilation,
        tile_h=tile_h, Wo=Wo, in_rows=in_rows, n_htiles=n_ht)

    flops = 2 * B * Ho * Wo * Cin_p * (KH * KW + Cout_p)
    bytes_accessed = (xp.size * in_itm + wdw.size * in_itm + wpw.size * in_itm
                      + B * Ho * Wo * Cout_p * out_itm)

    out_flat = pl.pallas_call(
        kernel,
        out_shape=jax.ShapeDtypeStruct((B, Ho * Wo, Cout_p), x_nchw.dtype),
        grid_spec=pltpu.PrefetchScalarGridSpec(
            num_scalar_prefetch=0,
            grid=(B, n_ht),
            in_specs=[
                pl.BlockSpec(memory_space=pl.ANY),                      # input stays in HBM
                pl.BlockSpec((KH, KW, Cin_p), lambda b, t: (0, 0, 0)),  # depthwise w
                pl.BlockSpec((Cin_p, Cout_p), lambda b, t: (0, 0)),     # pointwise w
            ],
            out_specs=pl.BlockSpec((1, tile_h * Wo, Cout_p),
                                   lambda b, t: (b, t, 0)),
            scratch_shapes=[
                pltpu.VMEM((2, in_rows, Wp, Cin_p), xp.dtype),
                pltpu.SemaphoreType.DMA((2,)),
            ]),
        compiler_params=pltpu.CompilerParams(
            dimension_semantics=("parallel", "arbitrary"),
            vmem_limit_bytes=64 * 1024 * 1024),
        cost_estimate=pl.CostEstimate(flops=int(flops), transcendentals=0,
                                      bytes_accessed=int(bytes_accessed)),
    )(xp, wdw, wpw)

    out = out_flat.reshape(B, Ho, Wo, Cout_p)[:, :, :, :Cout]
    return jnp.transpose(out, (0, 3, 1, 2))                   # back to NCHW


def _reference(x_nchw, w_dw, w_pw, *, stride, padding, dilation):
    """Pure-JAX reference matching PyTorch Conv2d semantics (full f32 precision)."""
    Cin = x_nchw.shape[1]
    y = lax.conv_general_dilated(
        x_nchw, w_dw,
        window_strides=(stride, stride),
        padding=[(padding, padding), (padding, padding)],
        rhs_dilation=(dilation, dilation),
        feature_group_count=Cin,
        dimension_numbers=("NCHW", "OIHW", "NCHW"),
        precision=lax.Precision.HIGHEST)
    y = lax.conv_general_dilated(
        y, w_pw, window_strides=(1, 1), padding=[(0, 0), (0, 0)],
        dimension_numbers=("NCHW", "OIHW", "NCHW"),
        precision=lax.Precision.HIGHEST)
    return y


if __name__ == "__main__":
    key = jax.random.PRNGKey(0)
    k_x, k_dw, k_pw = jax.random.split(key, 3)

    B, Cin, Cout, H, W = 2, 4, 8, 16, 16
    ksize, stride, padding, dilation = 3, 1, 1, 1

    x = jax.random.normal(k_x, (B, Cin, H, W), jnp.float32)
    # PyTorch parameter shapes: conv1.weight (Cin, 1, K, K), pointwise.weight (Cout, Cin, 1, 1)
    w_dw = jax.random.normal(k_dw, (Cin, 1, ksize, ksize), jnp.float32) * 0.1
    w_pw = jax.random.normal(k_pw, (Cout, Cin, 1, 1), jnp.float32) * 0.1

    # max_tile_h=8 forces >1 row tile at this small test size so the halo-DMA
    # pipeline is exercised; at real sizes tile_h is chosen from the VMEM budget.
    out = separable_conv2d(x, w_dw, w_pw, stride=stride, padding=padding,
                           dilation=dilation, max_tile_h=8)
    out = jax.block_until_ready(out)

    ref = _reference(x, w_dw, w_pw,
                     stride=stride, padding=padding, dilation=dilation)
    assert out.shape == ref.shape, (out.shape, ref.shape)
    assert jnp.allclose(out, ref, atol=1e-3, rtol=1e-3), "mismatch vs reference conv"

    print("KERNEL_OK")
</pallas_src>

<mosaic_0001>
module attributes {stable_mosaic.version = 11 : i64} {
  func.func @_sepconv_kernel(%arg0: i32, %arg1: i32, %arg2: memref<2x18x18x128xf32, #tpu.memory_space<any>>, %arg3: memref<3x3x128xf32, #tpu.memory_space<vmem>>, %arg4: memref<128x128xf32, #tpu.memory_space<vmem>>, %arg5: memref<1x128x128xf32, #tpu.memory_space<vmem>>, %arg6: memref<2x10x18x128xf32, #tpu.memory_space<vmem>>, %arg7: memref<2x!tpu.dma_semaphore, #tpu.memory_space<semaphore_mem>>) attributes {dimension_semantics = [#tpu.dimension_semantics<parallel>, #tpu.dimension_semantics<arbitrary>], iteration_bounds = array<i64: 2, 2>, scalar_prefetch = 0 : i64, scratch_operands = 2 : i64, tpu.core_type = #tpu.core_type<tc>, window_params = [{}, {pipeline_mode = #tpu.pipeline_mode<synchronous>, transform_indices = @transform_1, window_bounds = array<i64: 3, 3, 128>}, {pipeline_mode = #tpu.pipeline_mode<synchronous>, transform_indices = @transform_2, window_bounds = array<i64: 128, 128>}, {transform_indices = @transform_3, window_bounds = array<i64: 1, 128, 128>}]} {
    %c0_i32 = arith.constant 0 : i32
    %0 = arith.cmpi eq, %arg1, %c0_i32 : i32
    %1 = arith.extui %0 : i1 to i32
    %c0_i32_0 = arith.constant 0 : i32
    %2 = arith.cmpi ne, %1, %c0_i32_0 : i32
    scf.if %2 {
      %c0_i32_24 = arith.constant 0 : i32
      %99 = tpu.assume_multiple %c0_i32_24, 8 : i32
      %c0_i32_25 = arith.constant 0 : i32
      %c0_i32_26 = arith.constant 0 : i32
      %c0_i32_27 = arith.constant 0 : i32
      %c0_i32_28 = arith.constant 0 : i32
      %100 = tpu.memref_slice %arg2[%arg0, %99, %c0_i32_27, %c0_i32_28] : memref<2x18x18x128xf32, #tpu.memory_space<any>> -> memref<1x10x18x128xf32, #tpu.memory_space<any>>
      %101 = tpu.memref_squeeze %100 : memref<1x10x18x128xf32, #tpu.memory_space<any>> -> memref<10x18x128xf32, #tpu.memory_space<any>>
      %c0_i32_29 = arith.constant 0 : i32
      %c0_i32_30 = arith.constant 0 : i32
      %c0_i32_31 = arith.constant 0 : i32
      %102 = tpu.memref_slice %arg6[%c0_i32_25, %c0_i32_29, %c0_i32_30, %c0_i32_31] : memref<2x10x18x128xf32, #tpu.memory_space<vmem>> -> memref<1x10x18x128xf32, #tpu.memory_space<vmem>>
      %103 = tpu.memref_squeeze %102 : memref<1x10x18x128xf32, #tpu.memory_space<vmem>> -> memref<10x18x128xf32, #tpu.memory_space<vmem>>
      %104 = tpu.memref_slice %arg7[%c0_i32_26] : memref<2x!tpu.dma_semaphore, #tpu.memory_space<semaphore_mem>> -> memref<1x!tpu.dma_semaphore, #tpu.memory_space<semaphore_mem>>
      %105 = tpu.memref_squeeze %104 : memref<1x!tpu.dma_semaphore, #tpu.memory_space<semaphore_mem>> -> memref<!tpu.dma_semaphore, #tpu.memory_space<semaphore_mem>>
      tpu.enqueue_dma source(%101 : memref<10x18x128xf32, #tpu.memory_space<any>>) target(%103 : memref<10x18x128xf32, #tpu.memory_space<vmem>>) target_semaphore(%105 : memref<!tpu.dma_semaphore, #tpu.memory_space<semaphore_mem>>)
    } else {
    }
    %c2_i32 = arith.constant 2 : i32
    %c0_i32_1 = arith.constant 0 : i32
    %3 = arith.cmpi eq, %c2_i32, %c0_i32_1 : i32
    %c1_i32 = arith.constant 1 : i32
    %4 = arith.select %3, %c1_i32, %c2_i32 : i32
    %5 = arith.remsi %arg1, %4 : i32
    %c0_i32_2 = arith.constant 0 : i32
    %6 = arith.cmpi ne, %5, %c0_i32_2 : i32
    %c0_i32_3 = arith.constant 0 : i32
    %7 = arith.cmpi slt, %5, %c0_i32_3 : i32
    %c0_i32_4 = arith.constant 0 : i32
    %8 = arith.cmpi slt, %4, %c0_i32_4 : i32
    %9 = arith.xori %7, %8 : i1
    %10 = arith.andi %9, %6 : i1
    %11 = arith.addi %5, %4 : i32
    %12 = arith.select %10, %11, %5 : i32
    %c8_i32 = arith.constant 8 : i32
    %13 = arith.muli %arg1, %c8_i32 : i32
    %14 = tpu.assume_multiple %13, 8 : i32
    %c0_i32_5 = arith.constant 0 : i32
    %c0_i32_6 = arith.constant 0 : i32
    %15 = tpu.memref_slice %arg2[%arg0, %14, %c0_i32_5, %c0_i32_6] : memref<2x18x18x128xf32, #tpu.memory_space<any>> -> memref<1x10x18x128xf32, #tpu.memory_space<any>>
    %16 = tpu.memref_squeeze %15 : memref<1x10x18x128xf32, #tpu.memory_space<any>> -> memref<10x18x128xf32, #tpu.memory_space<any>>
    %c0_i32_7 = arith.constant 0 : i32
    %c0_i32_8 = arith.constant 0 : i32
    %c0_i32_9 = arith.constant 0 : i32
    %17 = tpu.memref_slice %arg6[%12, %c0_i32_7, %c0_i32_8, %c0_i32_9] : memref<2x10x18x128xf32, #tpu.memory_space<vmem>> -> memref<1x10x18x128xf32, #tpu.memory_space<vmem>>
    %18 = tpu.memref_squeeze %17 : memref<1x10x18x128xf32, #tpu.memory_space<vmem>> -> memref<10x18x128xf32, #tpu.memory_space<vmem>>
    %19 = tpu.memref_slice %arg7[%12] : memref<2x!tpu.dma_semaphore, #tpu.memory_space<semaphore_mem>> -> memref<1x!tpu.dma_semaphore, #tpu.memory_space<semaphore_mem>>
    %20 = tpu.memref_squeeze %19 : memref<1x!tpu.dma_semaphore, #tpu.memory_space<semaphore_mem>> -> memref<!tpu.dma_semaphore, #tpu.memory_space<semaphore_mem>>
    tpu.wait_dma2 semaphore(%20 : memref<!tpu.dma_semaphore, #tpu.memory_space<semaphore_mem>>) src(%16 : memref<10x18x128xf32, #tpu.memory_space<any>>) dst(%18 : memref<10x18x128xf32, #tpu.memory_space<vmem>>)
    %c1_i32_10 = arith.constant 1 : i32
    %21 = arith.addi %arg1, %c1_i32_10 : i32
    %c2_i32_11 = arith.constant 2 : i32
    %22 = arith.cmpi slt, %21, %c2_i32_11 : i32
    %23 = arith.extui %22 : i1 to i32
    %c0_i32_12 = arith.constant 0 : i32
    %24 = arith.cmpi ne, %23, %c0_i32_12 : i32
    scf.if %24 {
      %c1_i32_24 = arith.constant 1 : i32
      %99 = arith.addi %arg1, %c1_i32_24 : i32
      %c1_i32_25 = arith.constant 1 : i32
      %100 = arith.addi %arg1, %c1_i32_25 : i32
      %c2_i32_26 = arith.constant 2 : i32
      %c0_i32_27 = arith.constant 0 : i32
      %101 = arith.cmpi eq, %c2_i32_26, %c0_i32_27 : i32
      %c1_i32_28 = arith.constant 1 : i32
      %102 = arith.select %101, %c1_i32_28, %c2_i32_26 : i32
      %103 = arith.remsi %100, %102 : i32
      %c0_i32_29 = arith.constant 0 : i32
      %104 = arith.cmpi ne, %103, %c0_i32_29 : i32
      %c0_i32_30 = arith.constant 0 : i32
      %105 = arith.cmpi slt, %103, %c0_i32_30 : i32
      %c0_i32_31 = arith.constant 0 : i32
      %106 = arith.cmpi slt, %102, %c0_i32_31 : i32
      %107 = arith.xori %105, %106 : i1
      %108 = arith.andi %107, %104 : i1
      %109 = arith.addi %103, %102 : i32
      %110 = arith.select %108, %109, %103 : i32
      %c8_i32_32 = arith.constant 8 : i32
      %111 = arith.muli %99, %c8_i32_32 : i32
      %112 = tpu.assume_multiple %111, 8 : i32
      %c0_i32_33 = arith.constant 0 : i32
      %c0_i32_34 = arith.constant 0 : i32
      %113 = tpu.memref_slice %arg2[%arg0, %112, %c0_i32_33, %c0_i32_34] : memref<2x18x18x128xf32, #tpu.memory_space<any>> -> memref<1x10x18x128xf32, #tpu.memory_space<any>>
      %114 = tpu.memref_squeeze %113 : memref<1x10x18x128xf32, #tpu.memory_space<any>> -> memref<10x18x128xf32, #tpu.memory_space<any>>
      %c0_i32_35 = arith.constant 0 : i32
      %c0_i32_36 = arith.constant 0 : i32
      %c0_i32_37 = arith.constant 0 : i32
      %115 = tpu.memref_slice %arg6[%110, %c0_i32_35, %c0_i32_36, %c0_i32_37] : memref<2x10x18x128xf32, #tpu.memory_space<vmem>> -> memref<1x10x18x128xf32, #tpu.memory_space<vmem>>
      %116 = tpu.memref_squeeze %115 : memref<1x10x18x128xf32, #tpu.memory_space<vmem>> -> memref<10x18x128xf32, #tpu.memory_space<vmem>>
      %117 = tpu.memref_slice %arg7[%110] : memref<2x!tpu.dma_semaphore, #tpu.memory_space<semaphore_mem>> -> memref<1x!tpu.dma_semaphore, #tpu.memory_space<semaphore_mem>>
      %118 = tpu.memref_squeeze %117 : memref<1x!tpu.dma_semaphore, #tpu.memory_space<semaphore_mem>> -> memref<!tpu.dma_semaphore, #tpu.memory_space<semaphore_mem>>
      tpu.enqueue_dma source(%114 : memref<10x18x128xf32, #tpu.memory_space<any>>) target(%116 : memref<10x18x128xf32, #tpu.memory_space<vmem>>) target_semaphore(%118 : memref<!tpu.dma_semaphore, #tpu.memory_space<semaphore_mem>>)
    } else {
    }
    %25 = arith.index_cast %12 : i32 to index
    %c0 = arith.constant 0 : index
    %c0_13 = arith.constant 0 : index
    %c0_14 = arith.constant 0 : index
    %26 = vector.load %arg6[%25, %c0, %c0_13, %c0_14] : memref<2x10x18x128xf32, #tpu.memory_space<vmem>>, vector<1x10x18x128xf32>
    %27 = vector.shape_cast %26 : vector<1x10x18x128xf32> to vector<10x18x128xf32>
    %c0_15 = arith.constant 0 : index
    %c0_16 = arith.constant 0 : index
    %c0_17 = arith.constant 0 : index
    %28 = vector.load %arg3[%c0_15, %c0_16, %c0_17] : memref<3x3x128xf32, #tpu.memory_space<vmem>>, vector<3x3x128xf32>
    %cst = arith.constant 0.000000e+00 : f32
    %29 = vector.broadcast %cst : f32 to vector<8x16x128xf32>
    %30 = vector.extract_strided_slice %27 {offsets = [0, 0, 0], sizes = [8, 16, 128], strides = [1, 1, 1]} : vector<10x18x128xf32> to vector<8x16x128xf32>
    %31 = vector.extract_strided_slice %28 {offsets = [0, 0, 0], sizes = [1, 1, 128], strides = [1, 1, 1]} : vector<3x3x128xf32> to vector<1x1x128xf32>
    %32 = vector.shape_cast %31 : vector<1x1x128xf32> to vector<128xf32>
    %33 = vector.shape_cast %32 : vector<128xf32> to vector<1x1x128xf32>
    %34 = vector.broadcast %33 : vector<1x1x128xf32> to vector<8x16x128xf32>
    %35 = arith.mulf %30, %34 : vector<8x16x128xf32>
    %36 = arith.addf %29, %35 : vector<8x16x128xf32>
    %37 = vector.extract_strided_slice %27 {offsets = [0, 1, 0], sizes = [8, 16, 128], strides = [1, 1, 1]} : vector<10x18x128xf32> to vector<8x16x128xf32>
    %38 = vector.extract_strided_slice %28 {offsets = [0, 1, 0], sizes = [1, 1, 128], strides = [1, 1, 1]} : vector<3x3x128xf32> to vector<1x1x128xf32>
    %39 = vector.shape_cast %38 : vector<1x1x128xf32> to vector<128xf32>
    %40 = vector.shape_cast %39 : vector<128xf32> to vector<1x1x128xf32>
    %41 = vector.broadcast %40 : vector<1x1x128xf32> to vector<8x16x128xf32>
    %42 = arith.mulf %37, %41 : vector<8x16x128xf32>
    %43 = arith.addf %36, %42 : vector<8x16x128xf32>
    %44 = vector.extract_strided_slice %27 {offsets = [0, 2, 0], sizes = [8, 16, 128], strides = [1, 1, 1]} : vector<10x18x128xf32> to vector<8x16x128xf32>
    %45 = vector.extract_strided_slice %28 {offsets = [0, 2, 0], sizes = [1, 1, 128], strides = [1, 1, 1]} : vector<3x3x128xf32> to vector<1x1x128xf32>
    %46 = vector.shape_cast %45 : vector<1x1x128xf32> to vector<128xf32>
    %47 = vector.shape_cast %46 : vector<128xf32> to vector<1x1x128xf32>
    %48 = vector.broadcast %47 : vector<1x1x128xf32> to vector<8x16x128xf32>
    %49 = arith.mulf %44, %48 : vector<8x16x128xf32>
    %50 = arith.addf %43, %49 : vector<8x16x128xf32>
    %51 = vector.extract_strided_slice %27 {offsets = [1, 0, 0], sizes = [8, 16, 128], strides = [1, 1, 1]} : vector<10x18x128xf32> to vector<8x16x128xf32>
    %52 = vector.extract_strided_slice %28 {offsets = [1, 0, 0], sizes = [1, 1, 128], strides = [1, 1, 1]} : vector<3x3x128xf32> to vector<1x1x128xf32>
    %53 = vector.shape_cast %52 : vector<1x1x128xf32> to vector<128xf32>
    %54 = vector.shape_cast %53 : vector<128xf32> to vector<1x1x128xf32>
    %55 = vector.broadcast %54 : vector<1x1x128xf32> to vector<8x16x128xf32>
    %56 = arith.mulf %51, %55 : vector<8x16x128xf32>
    %57 = arith.addf %50, %56 : vector<8x16x128xf32>
    %58 = vector.extract_strided_slice %27 {offsets = [1, 1, 0], sizes = [8, 16, 128], strides = [1, 1, 1]} : vector<10x18x128xf32> to vector<8x16x128xf32>
    %59 = vector.extract_strided_slice %28 {offsets = [1, 1, 0], sizes = [1, 1, 128], strides = [1, 1, 1]} : vector<3x3x128xf32> to vector<1x1x128xf32>
    %60 = vector.shape_cast %59 : vector<1x1x128xf32> to vector<128xf32>
    %61 = vector.shape_cast %60 : vector<128xf32> to vector<1x1x128xf32>
    %62 = vector.broadcast %61 : vector<1x1x128xf32> to vector<8x16x128xf32>
    %63 = arith.mulf %58, %62 : vector<8x16x128xf32>
    %64 = arith.addf %57, %63 : vector<8x16x128xf32>
    %65 = vector.extract_strided_slice %27 {offsets = [1, 2, 0], sizes = [8, 16, 128], strides = [1, 1, 1]} : vector<10x18x128xf32> to vector<8x16x128xf32>
    %66 = vector.extract_strided_slice %28 {offsets = [1, 2, 0], sizes = [1, 1, 128], strides = [1, 1, 1]} : vector<3x3x128xf32> to vector<1x1x128xf32>
    %67 = vector.shape_cast %66 : vector<1x1x128xf32> to vector<128xf32>
    %68 = vector.shape_cast %67 : vector<128xf32> to vector<1x1x128xf32>
    %69 = vector.broadcast %68 : vector<1x1x128xf32> to vector<8x16x128xf32>
    %70 = arith.mulf %65, %69 : vector<8x16x128xf32>
    %71 = arith.addf %64, %70 : vector<8x16x128xf32>
    %72 = vector.extract_strided_slice %27 {offsets = [2, 0, 0], sizes = [8, 16, 128], strides = [1, 1, 1]} : vector<10x18x128xf32> to vector<8x16x128xf32>
    %73 = vector.extract_strided_slice %28 {offsets = [2, 0, 0], sizes = [1, 1, 128], strides = [1, 1, 1]} : vector<3x3x128xf32> to vector<1x1x128xf32>
    %74 = vector.shape_cast %73 : vector<1x1x128xf32> to vector<128xf32>
    %75 = vector.shape_cast %74 : vector<128xf32> to vector<1x1x128xf32>
    %76 = vector.broadcast %75 : vector<1x1x128xf32> to vector<8x16x128xf32>
    %77 = arith.mulf %72, %76 : vector<8x16x128xf32>
    %78 = arith.addf %71, %77 : vector<8x16x128xf32>
    %79 = vector.extract_strided_slice %27 {offsets = [2, 1, 0], sizes = [8, 16, 128], strides = [1, 1, 1]} : vector<10x18x128xf32> to vector<8x16x128xf32>
    %80 = vector.extract_strided_slice %28 {offsets = [2, 1, 0], sizes = [1, 1, 128], strides = [1, 1, 1]} : vector<3x3x128xf32> to vector<1x1x128xf32>
    %81 = vector.shape_cast %80 : vector<1x1x128xf32> to vector<128xf32>
    %82 = vector.shape_cast %81 : vector<128xf32> to vector<1x1x128xf32>
    %83 = vector.broadcast %82 : vector<1x1x128xf32> to vector<8x16x128xf32>
    %84 = arith.mulf %79, %83 : vector<8x16x128xf32>
    %85 = arith.addf %78, %84 : vector<8x16x128xf32>
    %86 = vector.extract_strided_slice %27 {offsets = [2, 2, 0], sizes = [8, 16, 128], strides = [1, 1, 1]} : vector<10x18x128xf32> to vector<8x16x128xf32>
    %87 = vector.extract_strided_slice %28 {offsets = [2, 2, 0], sizes = [1, 1, 128], strides = [1, 1, 1]} : vector<3x3x128xf32> to vector<1x1x128xf32>
    %88 = vector.shape_cast %87 : vector<1x1x128xf32> to vector<128xf32>
    %89 = vector.shape_cast %88 : vector<128xf32> to vector<1x1x128xf32>
    %90 = vector.broadcast %89 : vector<1x1x128xf32> to vector<8x16x128xf32>
    %91 = arith.mulf %86, %90 : vector<8x16x128xf32>
    %92 = arith.addf %85, %91 : vector<8x16x128xf32>
    %93 = vector.shape_cast %92 : vector<8x16x128xf32> to vector<128x128xf32>
    %c0_18 = arith.constant 0 : index
    %c0_19 = arith.constant 0 : index
    %94 = vector.load %arg4[%c0_18, %c0_19] : memref<128x128xf32, #tpu.memory_space<vmem>>, vector<128x128xf32>
    %cst_20 = arith.constant dense<0.000000e+00> : vector<128x128xf32>
    %95 = tpu.matmul %93, %94, %cst_20 {dimension_numbers = #tpu.dot_dimension_numbers<[1], [0], [0], [1], [0, 0, 1, 1], [], []>} : vector<128x128xf32>, vector<128x128xf32>, vector<128x128xf32> -> vector<128x128xf32>
    %c0_21 = arith.constant 0 : index
    %c0_22 = arith.constant 0 : index
    %c0_23 = arith.constant 0 : index
    %96 = vector.load %arg5[%c0_21, %c0_22, %c0_23] : memref<1x128x128xf32, #tpu.memory_space<vmem>>, vector<1x128x128xf32>
    %97 = vector.shape_cast %96 : vector<1x128x128xf32> to vector<128x128xf32>
    %98 = vector.shape_cast %95 : vector<128x128xf32> to vector<1x128x128xf32>
    tpu.vector_store %arg5[%c0_21, %c0_22, %c0_23], %98 {strides = array<i32>} : memref<1x128x128xf32, #tpu.memory_space<vmem>>, vector<1x128x128xf32>,
    return
  }
  func.func @transform_1(%arg0: i32, %arg1: i32) -> (i32, i32, i32) {
    %c0_i32 = arith.constant 0 : i32
    %c0_i32_0 = arith.constant 0 : i32
    %c0_i32_1 = arith.constant 0 : i32
    %c0_i32_2 = arith.constant 0 : i32
    return %c0_i32, %c0_i32_0, %c0_i32_1 : i32, i32, i32
  }
  func.func @transform_2(%arg0: i32, %arg1: i32) -> (i32, i32) {
    %c0_i32 = arith.constant 0 : i32
    %c0_i32_0 = arith.constant 0 : i32
    %c0_i32_1 = arith.constant 0 : i32
    return %c0_i32, %c0_i32_0 : i32, i32
  }
  func.func @transform_3(%arg0: i32, %arg1: i32) -> (i32, i32, i32) {
    %c0_i32 = arith.constant 0 : i32
    %c0_i32_0 = arith.constant 0 : i32
    return %arg0, %arg1, %c0_i32 : i32, i32, i32
  }
}

</mosaic_0001>

<bundles_post_ra>
// kernel: tpu_custom_call.1
= control target key start
LH: loop header
LB: loop body
LE: loop exit
PB: predicated region body
PF: predicated region fallthrough
CT: control target
= control target key end

     0   :  { %8 = vsyncpa [#allocation5], 0  ;;  %s3290_s0 = inlined_call_operand.vmem [shape: f32[2,18,18,128], index: 0, kind: input, shape index: {}]   ;;  %s3291_s1 = inlined_call_operand.vmem [shape: f32[3,3,128], index: 1, kind: input, shape index: {}]   ;;  %s3292_s2 = inlined_call_operand.vmem [shape: f32[128,128], index: 2, kind: input, shape index: {}]   ;;  %s3293_s3 = inlined_call_operand.hbm [shape: f32[2,256,128], index: 3, kind: output, shape index: {}]  }
   0x1   :  { %10 = vsyncpa [#allocation5 + $0x1], 0  ;;  %s2046_s12 = smov 0   ;;  %s2048_s13 = smov 0  }
   0x2   :  { %s2050_s14 = smov 0   ;;  %s2052_s15 = smov 0  }
   0x3   :  { %s2054_s16 = smov 0   ;;  %s2056_s17 = smov 0  }
   0x4   :  { %s2058_s18 = smov 0   ;;  %s2060_s19 = smov 0  }
   0x5 LB: > { %s1650_s20 = sadd.s32 4294967295, %s2021_s19   ;;  %s1651_s21 = sadd.s32 4294967294, %s2021_s19   ;;  %s2021_s19 = sphi %s2060_s19, %s16_s19   ;;  %s2017_s18 = sphi %s2058_s18, %s3334_s18   ;;  %s2013_s17 = sphi %s2056_s17, %s3333_s17   ;;  %s2009_s16 = sphi %s2054_s16, %s3332_s16   ;;  %s2005_s15 = sphi %s2052_s15, %s3331_s15   ;;  %s2001_s14 = sphi %s2050_s14, %s3330_s14   ;;  %s1997_s13 = sphi %s2048_s13, %s3329_s13   ;;  %s1993_s12 = sphi %s2046_s12, %s3328_s12  }
   0x6   : > { %s25_s22 = sadd.s32 1, %s2013_s17  ;;  %s28_s23 = sadd.s32 1, %s2017_s18 }
   0x7   : > { %p26_p0 = scmp.ge.s32.totalorder %s25_s22, 2  ;;  %p89_p1 = scmp.ne.s32.totalorder %s2001_s14, %s1997_s13 }
   0x8   : > { %p90_p2 = scmp.eq.s32.totalorder %s1650_s20, 3  ;;  %p95_p5 = scmp.ne.s32.totalorder %s1997_s13, %s1993_s12 }
   0x9   : > { %s3336_s22 = smov (%p26_p0, %s25_s22), 0  ;;  %s3338_s23 = smov (!%p26_p0, %s28_s23), %s2017_s18 }
   0xa   : > { %s75_s24 = ssub.s32 %s2013_s17, %s3336_s22  ;;  %p2097_p3 = por %p90_p2, %p89_p1 }
   0xb   : > { %p30_p4 = scmp.ge.s32.totalorder %s3338_s23, 2  ;;  %p96_p6 = scmp.eq.s32.totalorder %s1651_s21, 3 }
   0xc   : > { %p1653_p7 = scmp.ge.s32.totalorder %s2021_s19, 1  ;;  %p120_p9 = scmp.lt.s32.totalorder %s2021_s19, 5 }
   0xd   : > { %s3340_s23 = smov (%p30_p4, %s3338_s23), 0  ;;  %p2106_p8 = por %p96_p6, %p95_p5 }
   0xe   : > { %s74_s27 = ssub.s32 %s2017_s18, %s3340_s23  ;;  %s79_s28 = sadd.s32 1, %s2001_s14 }
   0xf   : > { %s76_s29 = sor.u32 %s75_s24, %s74_s27  ;;  %p121_p10 = pnand %p1653_p7, %p120_p9 }
  0x10   : > { %p77_p11 = scmp.eq.s32.totalorder %s76_s29, 0  ;;  %s3294_s4 = sand.u32 (!%p121_p10), 1, %s1997_s13  }
  0x11   : > { %124 = sbr.rel (%p121_p10) target bundleno = 460 (0x1cc), region = 28  ;;  %s1654_s5 = sshll.u32 (!%p121_p10), %s3294_s4, 7 }
  0x12   : > { %s2115_s30 = scalar_select %p77_p11, %s2001_s14, %s79_s28  }
  0x13   : > { %s2120_s6 = scalar_lea.vmem (!%p121_p10), [#allocation4], %s1654_s5  ;;  %p1655_p12 = scmp.ne.s32.totalorder (!%p121_p10), %s2005_s15, 0 }
  0x16   : > { %141 = sbr.rel (%p1655_p12) target bundleno = 45 (0x2d), region = 32 }
  0x17   : > { %s143_s7 = smul.u32 (!%p1655_p12), 432, %s2009_s16 }
  0x19   : > { %s2127_s10 = scalar_lea.vmem (!%p1655_p12), %s3290_s0, %s143_s7 }
  0x1b   : > { %v202_v0 = vld [vmem:[%s2127_s10] sm:$0xff]  ;;  %v204_v1 = vld [vmem:[%s2127_s10 + $0x8] sm:$0xff]  ;;  %v206_v2 = vld [vmem:[%s2127_s10 + $0x18] sm:$0xff] }
  0x1c   : > { %203 = vst [vmem:[#allocation2] sm:$0xff] %v202_v0  ;;  %205 = vst [vmem:[#allocation2 + $0x8] sm:$0xff] %v204_v1  ;;  %v208_v3 = vld [vmem:[%s2127_s10 + $0x20] sm:$0xff]  ;;  %v210_v4 = vld [vmem:[%s2127_s10 + $0x30] sm:$0xff] }
  0x1d   : > { %207 = vst [vmem:[#allocation2 + $0x18] sm:$0xff] %v206_v2  ;;  %v212_v5 = vld [vmem:[%s2127_s10 + $0x38] sm:$0xff]  ;;  %209 = vst [vmem:[#allocation2 + $0x20] sm:$0xff] %v208_v3  ;;  %v214_v6 = vld [vmem:[%s2127_s10 + $0x48] sm:$0xff] }
  0x1e   : > { %211 = vst [vmem:[#allocation2 + $0x30] sm:$0xff] %v210_v4  ;;  %213 = vst [vmem:[#allocation2 + $0x38] sm:$0xff] %v212_v5  ;;  %v216_v7 = vld [vmem:[%s2127_s10 + $0x50] sm:$0xff]  ;;  %v218_v8 = vld [vmem:[%s2127_s10 + $0x60] sm:$0xff] }
  0x1f   : > { %215 = vst [vmem:[#allocation2 + $0x48] sm:$0xff] %v214_v6  ;;  %217 = vst [vmem:[#allocation2 + $0x50] sm:$0xff] %v216_v7  ;;  %v220_v9 = vld [vmem:[%s2127_s10 + $0x68] sm:$0xff]  ;;  %v222_v10 = vld [vmem:[%s2127_s10 + $0x78] sm:$0xff] }
  0x20   : > { %219 = vst [vmem:[#allocation2 + $0x60] sm:$0xff] %v218_v8  ;;  %v224_v11 = vld [vmem:[%s2127_s10 + $0x80] sm:$0xff]  ;;  %221 = vst [vmem:[#allocation2 + $0x68] sm:$0xff] %v220_v9  ;;  %v226_v12 = vld [vmem:[%s2127_s10 + $0x90] sm:$0xff] }
  0x21   : > { %223 = vst [vmem:[#allocation2 + $0x78] sm:$0xff] %v222_v10  ;;  %225 = vst [vmem:[#allocation2 + $0x80] sm:$0xff] %v224_v11  ;;  %v228_v13 = vld [vmem:[%s2127_s10 + $0x98] sm:$0xff]  ;;  %v230_v14 = vld [vmem:[%s2127_s10 + $0xa8] sm:$0xff] }
  0x22   : > { %227 = vst [vmem:[#allocation2 + $0x90] sm:$0xff] %v226_v12  ;;  %229 = vst [vmem:[#allocation2 + $0x98] sm:$0xff] %v228_v13  ;;  %v232_v15 = vld [vmem:[%s2127_s10 + $0xb0] sm:$0xff]  ;;  %v234_v16 = vld [vmem:[%s2127_s10 + $0xc0] sm:$0xff] }
  0x23   : > { %231 = vst [vmem:[#allocation2 + $0xa8] sm:$0xff] %v230_v14  ;;  %v236_v17 = vld [vmem:[%s2127_s10 + $0xc8] sm:$0xff]  ;;  %233 = vst [vmem:[#allocation2 + $0xb0] sm:$0xff] %v232_v15  ;;  %v238_v18 = vld [vmem:[%s2127_s10 + $0xd8] sm:$0xff] }
  0x24   : > { %235 = vst [vmem:[#allocation2 + $0xc0] sm:$0xff] %v234_v16  ;;  %237 = vst [vmem:[#allocation2 + $0xc8] sm:$0xff] %v236_v17  ;;  %v240_v19 = vld [vmem:[%s2127_s10 + $0xe0] sm:$0xff]  ;;  %v1656_v20 = vld [vmem:[%s2127_s10 + $0x10] sm:$0x3] }
  0x25   : > { %239 = vst [vmem:[#allocation2 + $0xd8] sm:$0xff] %v238_v18  ;;  %241 = vst [vmem:[#allocation2 + $0xe0] sm:$0xff] %v240_v19  ;;  %v1657_v21 = vld [vmem:[%s2127_s10 + $0x28] sm:$0x3]  ;;  %v1658_v22 = vld [vmem:[%s2127_s10 + $0x40] sm:$0x3] }
  0x26   : > { %253 = vst [vmem:[#allocation2 + $0x10] sm:$0x3] %v1656_v20  ;;  %v1659_v23 = vld [vmem:[%s2127_s10 + $0x58] sm:$0x3]  ;;  %255 = vst [vmem:[#allocation2 + $0x28] sm:$0x3] %v1657_v21 }
  0x27   : > { %257 = vst [vmem:[#allocation2 + $0x40] sm:$0x3] %v1658_v22  ;;  %259 = vst [vmem:[#allocation2 + $0x58] sm:$0x3] %v1659_v23  ;;  %v1660_v24 = vld [vmem:[%s2127_s10 + $0x70] sm:$0x3] }
  0x28   : > { %v1661_v25 = vld [vmem:[%s2127_s10 + $0x88] sm:$0x3]  ;;  %v1662_v26 = vld [vmem:[%s2127_s10 + $0xa0] sm:$0x3]  ;;  %261 = vst [vmem:[#allocation2 + $0x70] sm:$0x3] %v1660_v24 }
  0x29   : > { %263 = vst [vmem:[#allocation2 + $0x88] sm:$0x3] %v1661_v25  ;;  %265 = vst [vmem:[#allocation2 + $0xa0] sm:$0x3] %v1662_v26  ;;  %v1663_v27 = vld [vmem:[%s2127_s10 + $0xb8] sm:$0x3] }
  0x2a   : > { %v1664_v28 = vld [vmem:[%s2127_s10 + $0xd0] sm:$0x3]  ;;  %v1665_v29 = vld [vmem:[%s2127_s10 + $0xe8] sm:$0x3]  ;;  %267 = vst [vmem:[#allocation2 + $0xb8] sm:$0x3] %v1663_v27 }
  0x2b   : > { %269 = vst [vmem:[#allocation2 + $0xd0] sm:$0x3] %v1664_v28  ;;  %271 = vst [vmem:[#allocation2 + $0xe8] sm:$0x3] %v1665_v29 }
  0x2c   : > { %275 = vsyncadd [#allocation3], 2880 }
  0x2d PF: > { %p276_p13 = scmp.lt.s32.totalorder %s2005_s15, 0  ;;  %s277_s11 = ssub.s32 0, %s2005_s15 }
  0x2e   : > { %s1666_s20 = smin.u32 %s2005_s15, %s277_s11 }
  0x2f   : > { %s279_s21 = sand.u32 1, %s1666_s20  }
  0x30   : > { %s280_s24 = ssub.s32 0, %s279_s21 }
  0x31   : > { %s3342_s24 = smov (!%p276_p13, %s280_s24), %s279_s21 }
  0x32   : > { %p1668_p0 = scmp.lt.s32.totalorder %s3342_s24, 0  ;;  %s286_s27 = sadd.s32 2, %s3342_s24 }
  0x34   : > { %s3344_s27 = smov (!%p1668_p0, %s286_s27), %s3342_s24 }
  0x35   : > { %s289_s28 = smul.u32 240, %s3344_s27  ;;  %s291_s5 = scalar_lea.sflag [#allocation3], %s3344_s27 }
  0x37   : > { %s2162_s29 = scalar_lea.vmem [#allocation2], %s289_s28 }
  0x38   : > { %1985 = dma.done.wait %s291_s5, 2880 }
  0x39   : > { %1986 = vsyncadd %s291_s5, 4294964416  ;;  %s296_s7 = sadd.s32 1, %s2005_s15 }
  0x3a   : > { %p1669_p1 = scmp.ge.s32.totalorder %s296_s7, 2 }
  0x3b   : > { %p301_p2 = scmp.lt.s32.totalorder (!%p1669_p1), %s296_s7, 0  ;;  %s302_s8 = ssub.s32 (!%p1669_p1), 0, %s296_s7 }
  0x3c   : > { %300 = sbr.rel (%p1669_p1) target bundleno = 88 (0x58), region = 73  ;;  %s1670_s9 = smin.u32 (!%p1669_p1), %s302_s8, %s296_s7 }
  0x3d   : > { %s1578_s10 = smul.u32 (!%p1669_p1), 192, %s2005_s15  ;;  %s304_s11 = sand.u32 (!%p1669_p1), 1, %s1670_s9  }
  0x3e   : > { %s1579_s20 = smul.u32 (!%p1669_p1), 432, %s2009_s16  ;;  %s305_s21 = ssub.s32 (!%p1669_p1), 0, %s304_s11 }
  0x40   : > { %s1580_s24 = sadd.s32 (!%p1669_p1), %s1579_s20, %s1578_s10 }
  0x41   : > { %s3346_s21 = smov (!%p301_p2, %s305_s21), %s304_s11  ;;  %s2170_s5 = scalar_lea.vmem %s3290_s0, %s1580_s24 }
  0x42   : > { %p1672_p4 = scmp.lt.s32.totalorder %s3346_s21, 0  ;;  %s311_s28 = sadd.s32 2, %s3346_s21  ;;  %v1674_v30 = vld [vmem:[%s2170_s5 + $0xc0] sm:$0xff]  ;;  %v1675_v31 = vld [vmem:[%s2170_s5 + $0xc8] sm:$0xff]  ;;  %v1676_v32 = vld [vmem:[%s2170_s5 + $0xd8] sm:$0xff] }
  0x43   : > { %v1677_v33 = vld [vmem:[%s2170_s5 + $0xe0] sm:$0xff]  ;;  %v1678_v34 = vld [vmem:[%s2170_s5 + $0xf0] sm:$0xff]  ;;  %v1679_v35 = vld [vmem:[%s2170_s5 + $0xf8] sm:$0xff] }
  0x44   : > { %s3348_s28 = smov (!%p1672_p4, %s311_s28), %s3346_s21  ;;  %v1680_v36 = vld [vmem:[%s2170_s5 + $0x108] sm:$0xff]  ;;  %v1681_v37 = vld [vmem:[%s2170_s5 + $0x110] sm:$0xff]  ;;  %v1682_v38 = vld [vmem:[%s2170_s5 + $0x120] sm:$0xff] }
  0x45   : > { %s318_s4 = smul.u32 240, %s3348_s28  ;;  %v1683_v39 = vld [vmem:[%s2170_s5 + $0x128] sm:$0xff]  ;;  %v1684_v40 = vld [vmem:[%s2170_s5 + $0x138] sm:$0xff]  ;;  %v1685_v41 = vld [vmem:[%s2170_s5 + $0x140] sm:$0xff]  ;;  %s320_s8 = scalar_lea.sflag [#allocation3], %s3348_s28 }
  0x46   : > { %v1686_v42 = vld [vmem:[%s2170_s5 + $0x150] sm:$0xff]  ;;  %v1687_v43 = vld [vmem:[%s2170_s5 + $0x158] sm:$0xff]  ;;  %v1688_v44 = vld [vmem:[%s2170_s5 + $0x168] sm:$0xff] }
  0x47   : > { %s2190_s7 = scalar_lea.vmem [#allocation2], %s318_s4  ;;  %v1689_v45 = vld [vmem:[%s2170_s5 + $0x170] sm:$0xff]  ;;  %v1690_v46 = vld [vmem:[%s2170_s5 + $0x180] sm:$0xff]  ;;  %v1691_v47 = vld [vmem:[%s2170_s5 + $0x188] sm:$0xff] }
  0x48   : > { %378 = vst [vmem:[%s2190_s7] sm:$0xff] %v1674_v30  ;;  %380 = vst [vmem:[%s2190_s7 + $0x8] sm:$0xff] %v1675_v31  ;;  %v1692_v48 = vld [vmem:[%s2170_s5 + $0x198] sm:$0xff]  ;;  %v1693_v49 = vld [vmem:[%s2170_s5 + $0x1a0] sm:$0xff] }
  0x49   : > { %382 = vst [vmem:[%s2190_s7 + $0x18] sm:$0xff] %v1676_v32  ;;  %384 = vst [vmem:[%s2190_s7 + $0x20] sm:$0xff] %v1677_v33  ;;  %v1694_v50 = vld [vmem:[%s2170_s5 + $0xd0] sm:$0x3]  ;;  %v1696_v51 = vld [vmem:[%s2170_s5 + $0xe8] sm:$0x3] }
  0x4a   : > { %386 = vst [vmem:[%s2190_s7 + $0x30] sm:$0xff] %v1678_v34  ;;  %388 = vst [vmem:[%s2190_s7 + $0x38] sm:$0xff] %v1679_v35  ;;  %v1698_v52 = vld [vmem:[%s2170_s5 + $0x100] sm:$0x3]  ;;  %v1700_v53 = vld [vmem:[%s2170_s5 + $0x118] sm:$0x3] }
  0x4b   : > { %390 = vst [vmem:[%s2190_s7 + $0x48] sm:$0xff] %v1680_v36  ;;  %392 = vst [vmem:[%s2190_s7 + $0x50] sm:$0xff] %v1681_v37  ;;  %v1702_v54 = vld [vmem:[%s2170_s5 + $0x130] sm:$0x3]  ;;  %v1704_v55 = vld [vmem:[%s2170_s5 + $0x148] sm:$0x3] }
  0x4c   : > { %394 = vst [vmem:[%s2190_s7 + $0x60] sm:$0xff] %v1682_v38  ;;  %396 = vst [vmem:[%s2190_s7 + $0x68] sm:$0xff] %v1683_v39  ;;  %v1706_v56 = vld [vmem:[%s2170_s5 + $0x160] sm:$0x3]  ;;  %v1708_v57 = vld [vmem:[%s2170_s5 + $0x178] sm:$0x3] }
  0x4d   : > { %398 = vst [vmem:[%s2190_s7 + $0x78] sm:$0xff] %v1684_v40  ;;  %400 = vst [vmem:[%s2190_s7 + $0x80] sm:$0xff] %v1685_v41  ;;  %v1710_v58 = vld [vmem:[%s2170_s5 + $0x190] sm:$0x3]  ;;  %v1712_v59 = vld [vmem:[%s2170_s5 + $0x1a8] sm:$0x3] }
  0x4e   : > { %402 = vst [vmem:[%s2190_s7 + $0x90] sm:$0xff] %v1686_v42  ;;  %404 = vst [vmem:[%s2190_s7 + $0x98] sm:$0xff] %v1687_v43 }
  0x4f   : > { %406 = vst [vmem:[%s2190_s7 + $0xa8] sm:$0xff] %v1688_v44  ;;  %408 = vst [vmem:[%s2190_s7 + $0xb0] sm:$0xff] %v1689_v45 }
  0x50   : > { %410 = vst [vmem:[%s2190_s7 + $0xc0] sm:$0xff] %v1690_v46  ;;  %412 = vst [vmem:[%s2190_s7 + $0xc8] sm:$0xff] %v1691_v47 }
  0x51   : > { %414 = vst [vmem:[%s2190_s7 + $0xd8] sm:$0xff] %v1692_v48  ;;  %416 = vst [vmem:[%s2190_s7 + $0xe0] sm:$0xff] %v1693_v49 }
  0x52   : > { %1695 = vst [vmem:[%s2190_s7 + $0x10] sm:$0x3] %v1694_v50  ;;  %1697 = vst [vmem:[%s2190_s7 + $0x28] sm:$0x3] %v1696_v51 }
  0x53   : > { %1699 = vst [vmem:[%s2190_s7 + $0x40] sm:$0x3] %v1698_v52  ;;  %1701 = vst [vmem:[%s2190_s7 + $0x58] sm:$0x3] %v1700_v53 }
  0x54   : > { %1703 = vst [vmem:[%s2190_s7 + $0x70] sm:$0x3] %v1702_v54  ;;  %1705 = vst [vmem:[%s2190_s7 + $0x88] sm:$0x3] %v1704_v55 }
  0x55   : > { %1707 = vst [vmem:[%s2190_s7 + $0xa0] sm:$0x3] %v1706_v56  ;;  %1709 = vst [vmem:[%s2190_s7 + $0xb8] sm:$0x3] %v1708_v57 }
  0x56   : > { %1711 = vst [vmem:[%s2190_s7 + $0xd0] sm:$0x3] %v1710_v58  ;;  %1713 = vst [vmem:[%s2190_s7 + $0xe8] sm:$0x3] %v1712_v59 }
  0x57   : > { %450 = vsyncadd %s320_s8, 2880 }
  0x58 PF: > { %v1353_v60 = vld [vmem:[%s3292_s2 + $0x78] sm:$0xff]  ;;  %v1352_v61 = vld [vmem:[%s3292_s2 + $0x70] sm:$0xff]  ;;  %v484_v62 = vlaneseq  ;;  %v1351_v63 = vld [vmem:[%s3292_s2 + $0x68] sm:$0xff]  ;;  %vm572_vm0 = vcmask 1046528   ;;  %vm697_vm1 = vcmask 1045504   ;;  %s1726_s11 = sshll.u32 %s2009_s16, 5 }
  0x59   : > { %1764 = vmatprep.subr.mxu0 %v1353_v60  ;;  %1820 = vmatprep.subr.mxu1 %v1353_v60  ;;  %v1350_v1 = vld [vmem:[%s3292_s2 + $0x60] sm:$0xff]  ;;  %v1349_v5 = vld [vmem:[%s3292_s2 + $0x58] sm:$0xff]  ;;  %v1348_v10 = vld [vmem:[%s3292_s2 + $0x50] sm:$0xff]  ;;  %s1531_s24 = sshll.u32 %s2120_s6, 4  ;;  %s2023_s7 = smov [#allocation4]   ;;  %s3233_s24 = int_to_ptr.vmem [resolvable:$true] %s1531_s24 }
  0x5a   : > { %1765 = vmatpush3.msra.mxu0 %v1353_v60  ;;  %1836 = vmatpush3.msra.mxu1 %v1353_v60  ;;  %v485_v0 = vshrl.u32 %v484_v62, 7  ;;  %v481_v8 = vld [vmem:[%s3291_s1] sm:$0x7]  ;;  %v482_v9 = vld [vmem:[%s3291_s1 + $0x4] sm:$0x7]  ;;  %v1347_v17 = vld [vmem:[%s3292_s2 + $0x48] sm:$0xff] }
  0x5b   : > { %1766 = vmatprep.subr.mxu0 %v1352_v61  ;;  %1821 = vmatprep.subr.mxu1 %v1352_v61  ;;  %v483_v23 = vld [vmem:[%s3291_s1 + $0x8] sm:$0x7]  ;;  %v1346_v27 = vld [vmem:[%s3292_s2 + $0x40] sm:$0xff]  ;;  %v1345_v36 = vld [vmem:[%s3292_s2 + $0x38] sm:$0xff]  ;;  %s1927_s4 = scalar_lea.vmem %s3233_s24, 2048  ;;  %s1931_s8 = sshll.u32 %s2023_s7, 4  ;;  %s1932_s8 = int_to_ptr.vmem [resolvable:$false] %s1931_s8 }
  0x5c   : > { %1767 = vmatpush3.msra.mxu0 %v1352_v61  ;;  %1837 = vmatpush3.msra.mxu1 %v1352_v61  ;;  %v486_v2 = vsub.s32 0, %v485_v0  ;;  %v2250_v3 = vsub.s32 1, %v485_v0  ;;  %v2252_v4 = vsub.s32 2, %v485_v0  ;;  %v1344_v46 = vld [vmem:[%s3292_s2 + $0x30] sm:$0xff]  ;;  %v1343_v56 = vld [vmem:[%s3292_s2 + $0x28] sm:$0xff]  ;;  %p1928_p5 = scmp.ne.s32.totalorder %s3233_s24, %s1927_s4  ;;  %s1933_s9 = scalar_lea.vmem %s1932_s8, 4096 }
  0x5d   : > { %1768 = vmatprep.subr.mxu0 %v1351_v63  ;;  %1822 = vmatprep.subr.mxu1 %v1351_v63  ;;  %v451_v6 = vld [vmem:[%s2162_s29] sm:$0xff]  ;;  %v2259_v7 = vld [vmem:[%s2162_s29 + $0x8] sm:$0xff]  ;;  %v2290_v18 = vld [vmem:[%s2162_s29 + $0x18] sm:$0xff]  ;;  %p1934_p9 = scmp.lt.s32.totalorder %s3233_s24, %s1932_s8  ;;  %p1935_p10 = scmp.lt.s32.totalorder %s1933_s9, %s1927_s4 }
  0x5e   : > { %1769 = vmatpush3.msra.mxu0 %v1351_v63  ;;  %1838 = vmatpush3.msra.mxu1 %v1351_v63  ;;  %v2270_v11 = vrot.slane %v481_v8, %v486_v2  ;;  %v2273_v12 = vrot.slane %v481_v8, %v2250_v3  ;;  %v2276_v13 = vrot.slane %v481_v8, %v2252_v4  ;;  %v2299_v22 = vld [vmem:[%s2162_s29 + $0x20] sm:$0xff]  ;;  %v2338_v41 = vld [vmem:[%s2162_s29 + $0x30] sm:$0xff]  ;;  %v2356_v50 = vld [vmem:[%s2162_s29 + $0x38] sm:$0xff]  ;;  %p1929_p6 = pnand %p1928_p5, %p2097_p3 }
  0x5f   : > { %1770 = vmatprep.subr.mxu0 %v1350_v1  ;;  %1823 = vmatprep.subr.mxu1 %v1350_v1  ;;  %v2278_v14 = vrot.slane %v482_v9, %v486_v2  ;;  %v2281_v15 = vrot.slane %v482_v9, %v2250_v3  ;;  %v2284_v16 = vrot.slane %v482_v9, %v2252_v4  ;;  %v2365_v54 = vld [vmem:[%s2162_s29 + $0x60] sm:$0xff]  ;;  %v2368_v55 = vld [vmem:[%s2162_s29 + $0x68] sm:$0xff]  ;;  %p1936_p11 = por %p1935_p10, %p1934_p9 }
  0x60   : > { %1771 = vmatpush3.msra.mxu0 %v1350_v1  ;;  %1839 = vmatpush3.msra.mxu1 %v1350_v1  ;;  %v488_v19 = vmul.f32 %v2270_v11, %v451_v6  ;;  %v524_v20 = vmul.f32 %v2273_v12, %v451_v6  ;;  %v2296_v21 = vmul.f32 %v2273_v12, %v2259_v7  ;;  %v1342_v63 = vld [vmem:[%s3292_s2 + $0x20] sm:$0xff]  ;;  %v1341_v9 = vld [vmem:[%s3292_s2 + $0x18] sm:$0xff]  ;;  %p1930_p7 = pneg %p1929_p6 }
  0x61   : > { %1772 = vmatprep.subr.mxu0 %v1349_v5  ;;  %1824 = vmatprep.subr.mxu1 %v1349_v5  ;;  %v649_v24 = vmul.f32 %v2276_v13, %v451_v6  ;;  %v2307_v25 = vmul.f32 %v2276_v13, %v2259_v7  ;;  %v774_v26 = vmul.f32 %v2278_v14, %v2290_v18 }
  0x62   : > { %1773 = vmatpush3.msra.mxu0 %v1349_v5  ;;  %1840 = vmatpush3.msra.mxu1 %v1349_v5  ;;  %v573_v28 = vrot.slane %v524_v20, 1  ;;  %v574_v29 = vrot.slane %v2296_v21, 1  ;;  %v810_v30 = vmul.f32 %v2281_v15, %v2290_v18  ;;  %v2319_v31 = vmul.f32 %v2281_v15, %v2299_v22  ;;  %p1937_p12 = pnand %p1936_p11, %p1930_p7 }
  0x63   : > { %1774 = vmatprep.subr.mxu0 %v1348_v10  ;;  %1825 = vmatprep.subr.mxu1 %v1348_v10  ;;  %v698_v32 = vrot.slane %v649_v24, 2  ;;  %v699_v33 = vrot.slane %v2307_v25, 2  ;;  %v934_v34 = vmul.f32 %v2284_v16, %v2290_v18  ;;  %v2326_v35 = vmul.f32 %v2284_v16, %v2299_v22 }
  0x64   : > { %1775 = vmatpush3.msra.mxu0 %v1348_v10  ;;  %1841 = vmatpush3.msra.mxu1 %v1348_v10  ;;  %v575_v37 = vsel %vm572_vm0, %v573_v28, %v574_v29  ;;  %v858_v38 = vrot.slane %v810_v30, 1  ;;  %v859_v39 = vrot.slane %v2319_v31, 1  ;;  %v2335_v40 = vrot.slane %v483_v23, %v486_v2 }
  0x65   : > { %1776 = vmatprep.subr.mxu0 %v1347_v17  ;;  %1826 = vmatprep.subr.mxu1 %v1347_v17  ;;  %v629_v42 = vadd.f32 %v575_v37, %v488_v19  ;;  %v700_v43 = vsel %vm697_vm1, %v698_v32, %v699_v33  ;;  %v982_v44 = vrot.slane %v934_v34, 2  ;;  %v983_v45 = vrot.slane %v2326_v35, 2  ;;  %v1340_v32 = vld [vmem:[%s3292_s2 + $0x10] sm:$0xff] }
  0x66   : > { %1777 = vmatpush3.msra.mxu0 %v1347_v17  ;;  %1842 = vmatpush3.msra.mxu1 %v1347_v17  ;;  %v860_v47 = vsel %vm572_vm0, %v858_v38, %v859_v39  ;;  %v1058_v48 = vmul.f32 %v2335_v40, %v2338_v41  ;;  %v2353_v49 = vrot.slane %v483_v23, %v2250_v3  ;;  %v2407_v17 = vld [vmem:[%s2162_s29 + $0x78] sm:$0xff] }
  0x67   : > { %1778 = vmatprep.subr.mxu0 %v1346_v27  ;;  %1827 = vmatprep.subr.mxu1 %v1346_v27  ;;  %v754_v51 = vadd.f32 %v700_v43, %v629_v42  ;;  %v984_v52 = vsel %vm697_vm1, %v982_v44, %v983_v45  ;;  %v2362_v53 = vrot.slane %v483_v23, %v2252_v4 }
  0x68   : > { %1779 = vmatpush3.msra.mxu0 %v1346_v27  ;;  %1843 = vmatpush3.msra.mxu1 %v1346_v27  ;;  %v1094_v57 = vmul.f32 %v2353_v49, %v2338_v41  ;;  %v2377_v58 = vmul.f32 %v2353_v49, %v2356_v50  ;;  %v496_v59 = vmul.f32 %v2270_v11, %v2365_v54  ;;  %v2418_v27 = vld [vmem:[%s2162_s29 + $0x80] sm:$0xff] }
  0x69   : > { %1780 = vmatprep.subr.mxu0 %v1345_v36  ;;  %1828 = vmatprep.subr.mxu1 %v1345_v36  ;;  %v790_v60 = vadd.f32 %v774_v26, %v754_v51  ;;  %v1218_v61 = vmul.f32 %v2362_v53, %v2338_v41  ;;  %v2385_v62 = vmul.f32 %v2362_v53, %v2356_v50 }
  0x6a   : > { %1781 = vmatpush3.msra.mxu0 %v1345_v36  ;;  %1844 = vmatpush3.msra.mxu1 %v1345_v36  ;;  %v1142_v0 = vrot.slane %v1094_v57, 1  ;;  %v1143_v1 = vrot.slane %v2377_v58, 1  ;;  %v536_v2 = vmul.f32 %v2273_v12, %v2365_v54  ;;  %v2395_v3 = vmul.f32 %v2273_v12, %v2368_v55  ;;  %v2449_v57 = vld [vmem:[%s2162_s29 + $0x90] sm:$0xff] }
  0x6b   : > { %1782 = vmatprep.subr.mxu0 %v1344_v46  ;;  %1829 = vmatprep.subr.mxu1 %v1344_v46  ;;  %v914_v4 = vadd.f32 %v860_v47, %v790_v60  ;;  %v1266_v5 = vrot.slane %v1218_v61, 2  ;;  %v1267_v6 = vrot.slane %v2385_v62, 2  ;;  %v661_v8 = vmul.f32 %v2276_v13, %v2365_v54 }
  0x6c   : > { %1783 = vmatpush3.msra.mxu0 %v1344_v46  ;;  %1845 = vmatpush3.msra.mxu1 %v1344_v46  ;;  %v1144_v10 = vsel %vm572_vm0, %v1142_v0, %v1143_v1  ;;  %v593_v19 = vrot.slane %v536_v2, 1  ;;  %v594_v20 = vrot.slane %v2395_v3, 1  ;;  %v2412_v23 = vmul.f32 %v2276_v13, %v2368_v55  ;;  %v1339_v46 = vld [vmem:[%s3292_s2 + $0x8] sm:$0xff] }
  0x6d   : > { %1784 = vmatprep.subr.mxu0 %v1343_v56  ;;  %1830 = vmatprep.subr.mxu1 %v1343_v56  ;;  %v1038_v24 = vadd.f32 %v984_v52, %v914_v4  ;;  %v1268_v26 = vsel %vm697_vm1, %v1266_v5, %v1267_v6  ;;  %v718_v28 = vrot.slane %v661_v8, 2  ;;  %v782_v30 = vmul.f32 %v2278_v14, %v2407_v17  ;;  %v453_v8 = vld [vmem:[%s2162_s29 + $0x10] sm:$0x3] }
  0x6e   : > { %1785 = vmatpush3.msra.mxu0 %v1343_v56  ;;  %1846 = vmatpush3.msra.mxu1 %v1343_v56  ;;  %v595_v34 = vsel %vm572_vm0, %v593_v19, %v594_v20  ;;  %v719_v36 = vrot.slane %v2412_v23, 2  ;;  %v822_v37 = vmul.f32 %v2281_v15, %v2407_v17  ;;  %v2433_v38 = vmul.f32 %v2281_v15, %v2418_v27 }
  0x6f   : > { %1786 = vmatprep.subr.mxu0 %v1342_v63  ;;  %1831 = vmatprep.subr.mxu1 %v1342_v63  ;;  %v1074_v42 = vadd.f32 %v1058_v48, %v1038_v24  ;;  %v637_v43 = vadd.f32 %v595_v34, %v496_v59  ;;  %v946_v44 = vmul.f32 %v2284_v16, %v2407_v17  ;;  %v2452_v59 = vld [vmem:[%s2162_s29 + $0x98] sm:$0xff] }
  0x70   : > { %1787 = vmatpush3.msra.mxu0 %v1342_v63  ;;  %1847 = vmatpush3.msra.mxu1 %v1342_v63  ;;  %v720_v47 = vsel %vm697_vm1, %v718_v28, %v719_v36  ;;  %v878_v51 = vrot.slane %v822_v37, 1  ;;  %v879_v52 = vrot.slane %v2433_v38, 1  ;;  %v2446_v48 = vmul.f32 %v2284_v16, %v2418_v27  ;;  %v1338_v63 = vld [vmem:[%s3292_s2] sm:$0xff] }
  0x71   : > { %1788 = vmatprep.subr.mxu0 %v1341_v9  ;;  %1832 = vmatprep.subr.mxu1 %v1341_v9  ;;  %v1198_v56 = vadd.f32 %v1144_v10, %v1074_v42  ;;  %v762_v60 = vadd.f32 %v720_v47, %v637_v43  ;;  %v1002_v61 = vrot.slane %v946_v44, 2  ;;  %v1106_v4 = vmul.f32 %v2353_v49, %v2449_v57 }
  0x72   : > { %1789 = vmatpush3.msra.mxu0 %v1341_v9  ;;  %1848 = vmatpush3.msra.mxu1 %v1341_v9  ;;  %v880_v0 = vsel %vm572_vm0, %v878_v51, %v879_v52  ;;  %v1003_v2 = vrot.slane %v2446_v48, 2  ;;  %v2465_v5 = vmul.f32 %v2353_v49, %v2452_v59  ;;  %v1230_v19 = vmul.f32 %v2362_v53, %v2449_v57 }
  0x73   : > { %1790 = vmatprep.subr.mxu0 %v1340_v32  ;;  %1833 = vmatprep.subr.mxu1 %v1340_v32  ;;  %v1322_v9 = vadd.f32 %v1268_v26, %v1198_v56  ;;  %v798_v10 = vadd.f32 %v782_v30, %v762_v60  ;;  %v1162_v28 = vrot.slane %v1106_v4, 1  ;;  %v2476_v34 = vmul.f32 %v2362_v53, %v2452_v59  ;;  %v2492_v60 = vld [vmem:[%s2162_s29 + $0x40] sm:$0x3] }
  0x74   : > { %1791 = vmatpush3.msra.mxu0 %v1340_v32  ;;  %1849 = vmatpush3.msra.mxu1 %v1340_v32  ;;  %v1004_v24 = vsel %vm697_vm1, %v1002_v61, %v1003_v2  ;;  %v3296_v32 = vrot.slane %v2465_v5, 1  ;;  %v1066_v30 = vmul.f32 %v2335_v40, %v2449_v57  ;;  %v1286_v37 = vrot.slane %v1230_v19, 2 }
  0x75   : > { %1792 = vmatprep.subr.mxu0 %v1339_v46  ;;  %1834 = vmatprep.subr.mxu1 %v1339_v46  ;;  %v922_v26 = vadd.f32 %v880_v0, %v798_v10  ;;  %v526_v42 = vmul.f32 %v2273_v12, %v453_v8  ;;  %v3295_v44 = vrot.slane %v2476_v34, 2  ;;  %v489_v47 = vmul.f32 %v2270_v11, %v2259_v7 }
  0x76   : > { %1793 = vmatpush3.msra.mxu0 %v1339_v46  ;;  %1850 = vmatpush3.msra.mxu1 %v1339_v46  ;;  %v1164_v43 = vsel %vm572_vm0, %v1162_v28, %v3296_v32  ;;  %v2486_v46 = vld [vmem:[%s2162_s29 + $0x28] sm:$0x3]  ;;  %v651_v51 = vmul.f32 %v2276_v13, %v453_v8  ;;  %v775_v7 = vmul.f32 %v2278_v14, %v2299_v22  ;;  %v3312_v38 = vrot.slane %v2465_v5, 1 }
  0x77   : > { %1794 = vmatprep.subr.mxu0 %v1338_v63  ;;  %1835 = vmatprep.subr.mxu1 %v1338_v63  ;;  %v1046_v56 = vadd.f32 %v1004_v24, %v922_v26  ;;  %v576_v61 = vrot.slane %v526_v42, 1  ;;  %v936_v0 = vmul.f32 %v2284_v16, %v2486_v46  ;;  %v1288_v4 = vsel %vm697_vm1, %v1286_v37, %v3295_v44  ;;  %v2509_v26 = vld [vmem:[%s2162_s29 + $0x70] sm:$0x3] }
  0x78   : > { %1795 = vmatpush3.msra.mxu0 %v1338_v63  ;;  %1851 = vmatpush3.msra.mxu1 %v1338_v63  ;;  %v812_v63 = vmul.f32 %v2281_v15, %v2486_v46  ;;  %v701_v10 = vrot.slane %v651_v51, 2  ;;  %v1096_v8 = vmul.f32 %v2353_v49, %v2492_v60  ;;  %v1220_v44 = vmul.f32 %v2362_v53, %v2492_v60 }
  0x79   : > { %1796 = vmatprep.mubr.f32.mxu0 %v1322_v9  ;;  %v1082_v9 = vadd.f32 %v1066_v30, %v1046_v56  ;;  %v577_v19 = vsel %vm572_vm0, %v574_v29, %v576_v61  ;;  %v985_v28 = vrot.slane %v936_v0, 2  ;;  %v1059_v30 = vmul.f32 %v2335_v40, %v2356_v50  ;;  %v2539_v61 = vld [vmem:[%s2162_s29 + $0xa0] sm:$0x3] }
  0x7a   : > { %v861_v24 = vrot.slane %v812_v63, 1  ;;  %v630_v42 = vadd.f32 %v577_v19, %v489_v47  ;;  %v702_v37 = vsel %vm697_vm1, %v699_v33, %v701_v10  ;;  %v1145_v51 = vrot.slane %v1096_v8, 1  ;;  %v2525_v33 = vld [vmem:[%s2162_s29 + $0x88] sm:$0x3] }
  0x7b   : > { %v1206_v32 = vadd.f32 %v1164_v43, %v1082_v9  ;;  %v986_v29 = vsel %vm697_vm1, %v983_v45, %v985_v28  ;;  %v1269_v47 = vrot.slane %v1220_v44, 2  ;;  %v497_v56 = vmul.f32 %v2270_v11, %v2368_v55 }
  0x7c   : > { %v862_v21 = vsel %vm572_vm0, %v859_v39, %v861_v24  ;;  %v755_v25 = vadd.f32 %v702_v37, %v630_v42  ;;  %v538_v43 = vmul.f32 %v2273_v12, %v2509_v26  ;;  %v1146_v35 = vsel %vm572_vm0, %v1143_v1, %v1145_v51 }
  0x7d   : > { %v1330_v31 = vadd.f32 %v1288_v4, %v1206_v32  ;;  %v663_v39 = vmul.f32 %v2276_v13, %v2509_v26  ;;  %v824_v45 = vmul.f32 %v2281_v15, %v2525_v33  ;;  %v783_v0 = vmul.f32 %v2278_v14, %v2418_v27 }
  0x7e   : > { %v791_v44 = vadd.f32 %v775_v7, %v755_v25  ;;  %v596_v63 = vrot.slane %v538_v43, 1  ;;  %v948_v32 = vmul.f32 %v2284_v16, %v2525_v33  ;;  %v1270_v58 = vsel %vm697_vm1, %v1267_v6, %v1269_v47 }
  0x7f   : > { %1808 = vmatprep.mubr.f32.mxu1 %v1330_v31  ;;  %v721_v1 = vrot.slane %v663_v39, 2  ;;  %v881_v4 = vrot.slane %v824_v45, 1  ;;  %v1108_v10 = vmul.f32 %v2353_v49, %v2539_v61  ;;  %v1232_v19 = vmul.f32 %v2362_v53, %v2539_v61 }
  0x80   : > { %v915_v7 = vadd.f32 %v862_v21, %v791_v44  ;;  %v597_v8 = vsel %vm572_vm0, %v594_v20, %v596_v63  ;;  %v1005_v9 = vrot.slane %v948_v32, 2  ;;  %v1067_v6 = vmul.f32 %v2335_v40, %v2452_v59 }
  0x81   : > { %v638_v24 = vadd.f32 %v597_v8, %v497_v56  ;;  %v722_v62 = vsel %vm697_vm1, %v719_v36, %v721_v1  ;;  %v1165_v28 = vrot.slane %v1108_v10, 1  ;;  %v882_v3 = vsel %vm572_vm0, %v879_v52, %v881_v4  ;;  %v2602_v10 = vld [vmem:[%s2162_s29 + $0x48] sm:$0xff] }
  0x82   : > { %v1039_v42 = vadd.f32 %v986_v29, %v915_v7  ;;  %v1006_v20 = vsel %vm697_vm1, %v1003_v2, %v1005_v9  ;;  %v1289_v37 = vrot.slane %v1232_v19, 2  ;;  %v490_v23 = vmul.f32 %v2270_v11, %v2290_v18  ;;  %v2605_v7 = vld [vmem:[%s2162_s29 + $0x50] sm:$0xff] }
  0x83   : > { %v763_v51 = vadd.f32 %v722_v62, %v638_v24  ;;  %v527_v36 = vmul.f32 %v2273_v12, %v2290_v18  ;;  %v2572_v21 = vmul.f32 %v2273_v12, %v2299_v22  ;;  %v1166_v52 = vsel %vm572_vm0, %v3312_v38, %v1165_v28 }
  0x84   : > { %v1075_v29 = vadd.f32 %v1059_v30, %v1039_v42  ;;  %v652_v48 = vmul.f32 %v2276_v13, %v2290_v18  ;;  %v2581_v2 = vmul.f32 %v2276_v13, %v2299_v22  ;;  %v776_v30 = vmul.f32 %v2278_v14, %v2338_v41 }
  0x85   : > { %v799_v25 = vadd.f32 %v783_v0, %v763_v51  ;;  %v578_v47 = vrot.slane %v527_v36, 1  ;;  %v579_v56 = vrot.slane %v2572_v21, 1  ;;  %v813_v18 = vmul.f32 %v2281_v15, %v2338_v41 }
  0x86   : > { %v1199_v43 = vadd.f32 %v1146_v35, %v1075_v29  ;;  %v703_v5 = vrot.slane %v652_v48, 2  ;;  %v704_v31 = vrot.slane %v2581_v2, 2  ;;  %v2594_v44 = vmul.f32 %v2281_v15, %v2356_v50 }
  0x87   : > { %v923_v39 = vadd.f32 %v882_v3, %v799_v25  ;;  %v580_v45 = vsel %vm572_vm0, %v578_v47, %v579_v56  ;;  %v937_v63 = vmul.f32 %v2284_v16, %v2338_v41  ;;  %v863_v1 = vrot.slane %v813_v18, 1 }
  0x88   : > { %v1323_v0 = vadd.f32 %v1270_v58, %v1199_v43  ;;  %v631_v35 = vadd.f32 %v580_v45, %v490_v23  ;;  %v705_v32 = vsel %vm697_vm1, %v703_v5, %v704_v31  ;;  %v864_v8 = vrot.slane %v2594_v44, 1 }
  0x89   : > { %v1047_v4 = vadd.f32 %v1006_v20, %v923_v39  ;;  %v2610_v9 = vmul.f32 %v2284_v16, %v2356_v50  ;;  %v987_v19 = vrot.slane %v937_v63, 2  ;;  %v3313_v58 = vrot.slane %v2476_v34, 2 }
  0x8a   : > { %1797 = vmatmul.mubr.f32.vlgmr.msra.gmra.mxu0 %v1323_v0  ;;  %v756_v62 = vadd.f32 %v705_v32, %v631_v35  ;;  %v1097_v28 = vmul.f32 %v2353_v49, %v2602_v10  ;;  %v2619_v42 = vmul.f32 %v2353_v49, %v2605_v7  ;;  %v865_v20 = vsel %vm572_vm0, %v863_v1, %v864_v8 }
  0x8b   : > { %v1290_v24 = vsel %vm697_vm1, %v3313_v58, %v1289_v37  ;;  %v1083_v3 = vadd.f32 %v1067_v6, %v1047_v4  ;;  %v988_v51 = vrot.slane %v2610_v9, 2  ;;  %v1221_v34 = vmul.f32 %v2362_v53, %v2602_v10 }
  0x8c   : > { %v792_v23 = vadd.f32 %v776_v30, %v756_v62  ;;  %v1147_v37 = vrot.slane %v1097_v28, 1  ;;  %v3303_v36 = vrot.slane %v2619_v42, 1  ;;  %v2630_v29 = vmul.f32 %v2362_v53, %v2605_v7 }
  0x8d   : > { %v1207_v38 = vadd.f32 %v1166_v52, %v1083_v3  ;;  %v989_v6 = vsel %vm697_vm1, %v987_v19, %v988_v51  ;;  %v1060_v48 = vmul.f32 %v2335_v40, %v2602_v10  ;;  %v1271_v25 = vrot.slane %v1221_v34, 2 }
  0x8e   : > { %v916_v47 = vadd.f32 %v865_v20, %v792_v23  ;;  %v3302_v43 = vrot.slane %v2630_v29, 2  ;;  %v498_v30 = vmul.f32 %v2270_v11, %v2407_v17  ;;  %v539_v5 = vmul.f32 %v2273_v12, %v2407_v17 }
  0x8f   : > { %v1331_v18 = vadd.f32 %v1290_v24, %v1207_v38  ;;  %v2644_v52 = vmul.f32 %v2273_v12, %v2418_v27  ;;  %v664_v39 = vmul.f32 %v2276_v13, %v2407_v17  ;;  %v2650_v45 = vmul.f32 %v2276_v13, %v2418_v27 }
  0x90   : > { %v1040_v63 = vadd.f32 %v989_v6, %v916_v47  ;;  %v1149_v0 = vsel %vm572_vm0, %v1147_v37, %v3303_v36  ;;  %v1273_v35 = vsel %vm697_vm1, %v1271_v25, %v3302_v43  ;;  %v598_v32 = vrot.slane %v539_v5, 1  ;;  %v2681_v6 = vld [vmem:[%s2162_s29 + $0xa8] sm:$0xff] }
  0x91   : > { %1809 = vmatmul.mubr.f32.vlgmr.msra.gmra.mxu1 %v1331_v18  ;;  %v3298_v1 = vrot.slane %v2644_v52, 1  ;;  %v723_v4 = vrot.slane %v664_v39, 2  ;;  %v3297_v19 = vrot.slane %v2650_v45, 2  ;;  %v825_v58 = vmul.f32 %v2281_v15, %v2449_v57 }
  0x92   : > { %v1076_v24 = vadd.f32 %v1060_v48, %v1040_v63  ;;  %v2664_v62 = vmul.f32 %v2281_v15, %v2452_v59  ;;  %v949_v28 = vmul.f32 %v2284_v16, %v2449_v57  ;;  %v2670_v3 = vmul.f32 %v2284_v16, %v2452_v59  ;;  %v2684_v48 = vld [vmem:[%s2162_s29 + $0xb0] sm:$0xff] }
  0x93   : > { %v600_v20 = vsel %vm572_vm0, %v598_v32, %v3298_v1  ;;  %v725_v34 = vsel %vm697_vm1, %v723_v4, %v3297_v19  ;;  %v784_v23 = vmul.f32 %v2278_v14, %v2449_v57  ;;  %v883_v37 = vrot.slane %v825_v58, 1 }
  0x94   : > { %v1200_v38 = vadd.f32 %v1149_v0, %v1076_v24  ;;  %v639_v25 = vadd.f32 %v600_v20, %v498_v30  ;;  %v3301_v47 = vrot.slane %v2664_v62, 1  ;;  %v1007_v5 = vrot.slane %v949_v28, 2 }
  0x95   : > { %v3299_v18 = vrot.slane %v2670_v3, 2  ;;  %v1109_v39 = vmul.f32 %v2353_v49, %v2681_v6  ;;  %v2692_v63 = vmul.f32 %v2353_v49, %v2684_v48  ;;  %v1233_v0 = vmul.f32 %v2362_v53, %v2681_v6 }
  0x96   : > { %v1324_v32 = vadd.f32 %v1273_v35, %v1200_v38  ;;  %v764_v4 = vadd.f32 %v725_v34, %v639_v25  ;;  %v1068_v30 = vmul.f32 %v2335_v40, %v2681_v6  ;;  %v2700_v58 = vmul.f32 %v2362_v53, %v2684_v48 }
  0x97   : > { %v885_v24 = vsel %vm572_vm0, %v883_v37, %v3301_v47  ;;  %v1167_v28 = vrot.slane %v1109_v39, 1  ;;  %v3300_v20 = vrot.slane %v2692_v63, 1  ;;  %v1291_v19 = vrot.slane %v1233_v0, 2 }
  0x98   : > { %1799 = vmatprep.mubr.f32.mxu0 %v1324_v32  ;;  %v800_v1 = vadd.f32 %v784_v23, %v764_v4  ;;  %v1009_v35 = vsel %vm697_vm1, %v1007_v5, %v3299_v18  ;;  %v1292_v34 = vrot.slane %v2700_v58, 2  ;;  %v529_v38 = vmul.f32 %v2273_v12, %v2486_v46  ;;  %v2722_v5 = vld [vmem:[%s2162_s29 + $0x58] sm:$0x3] }
  0x99   : > { %v1169_v25 = vsel %vm572_vm0, %v1167_v28, %v3300_v20  ;;  %v491_v37 = vmul.f32 %v2270_v11, %v2299_v22  ;;  %v654_v39 = vmul.f32 %v2276_v13, %v2486_v46  ;;  %v815_v23 = vmul.f32 %v2281_v15, %v2492_v60 }
  0x9a   : > { %v924_v0 = vadd.f32 %v885_v24, %v800_v1  ;;  %v581_v32 = vrot.slane %v529_v38, 1  ;;  %v777_v4 = vmul.f32 %v2278_v14, %v2356_v50  ;;  %v939_v18 = vmul.f32 %v2284_v16, %v2492_v60 }
  0x9b   : > { %v1293_v22 = vsel %vm697_vm1, %v1291_v19, %v1292_v34  ;;  %v706_v28 = vrot.slane %v654_v39, 2  ;;  %v866_v20 = vrot.slane %v815_v23, 1  ;;  %v1099_v46 = vmul.f32 %v2353_v49, %v2722_v5 }
  0x9c   : > { %v1048_v47 = vadd.f32 %v1009_v35, %v924_v0  ;;  %v582_v1 = vsel %vm572_vm0, %v579_v56, %v581_v32  ;;  %v990_v24 = vrot.slane %v939_v18, 2  ;;  %v1223_v38 = vmul.f32 %v2362_v53, %v2722_v5 }
  0x9d   : > { %v632_v43 = vadd.f32 %v582_v1, %v491_v37  ;;  %v707_v36 = vsel %vm697_vm1, %v704_v31, %v706_v28  ;;  %v1061_v19 = vmul.f32 %v2335_v40, %v2605_v7  ;;  %v1150_v39 = vrot.slane %v1099_v46, 1 }
  0x9e   : > { %v1084_v23 = vadd.f32 %v1068_v30, %v1048_v47  ;;  %v867_v21 = vsel %vm572_vm0, %v864_v8, %v866_v20  ;;  %v991_v56 = vsel %vm697_vm1, %v988_v51, %v990_v24  ;;  %v1274_v18 = vrot.slane %v1223_v38, 2  ;;  %v2764_v30 = vld [vmem:[%s2162_s29 + $0xb8] sm:$0x3] }
  0x9f   : > { %v757_v35 = vadd.f32 %v707_v36, %v632_v43  ;;  %v499_v2 = vmul.f32 %v2270_v11, %v2418_v27  ;;  %v541_v31 = vmul.f32 %v2273_v12, %v2525_v33  ;;  %v666_v37 = vmul.f32 %v2276_v13, %v2525_v33 }
  0xa0   : > { %v1208_v47 = vadd.f32 %v1169_v25, %v1084_v23  ;;  %v3314_v44 = vrot.slane %v2619_v42, 1  ;;  %v3315_v9 = vrot.slane %v2630_v29, 2  ;;  %v827_v36 = vmul.f32 %v2281_v15, %v2539_v61 }
  0xa1   : > { %v793_v43 = vadd.f32 %v777_v4, %v757_v35  ;;  %v601_v20 = vrot.slane %v541_v31, 1  ;;  %v726_v0 = vrot.slane %v666_v37, 2  ;;  %v951_v32 = vmul.f32 %v2284_v16, %v2539_v61 }
  0xa2   : > { %v1151_v8 = vsel %vm572_vm0, %v3314_v44, %v1150_v39  ;;  %v1275_v51 = vsel %vm697_vm1, %v3315_v9, %v1274_v18  ;;  %v1332_v25 = vadd.f32 %v1293_v22, %v1208_v47  ;;  %v785_v42 = vmul.f32 %v2278_v14, %v2452_v59 }
  0xa3   : > { %v886_v28 = vrot.slane %v827_v36, 1  ;;  %v1111_v29 = vmul.f32 %v2353_v49, %v2764_v30  ;;  %v917_v46 = vadd.f32 %v867_v21, %v793_v43  ;;  %v3316_v1 = vrot.slane %v2644_v52, 1 }
  0xa4   : > { %v3317_v24 = vrot.slane %v2650_v45, 2  ;;  %v1010_v39 = vrot.slane %v951_v32, 2  ;;  %1811 = vmatprep.mubr.f32.mxu1 %v1332_v25  ;;  %v1069_v22 = vmul.f32 %v2335_v40, %v2684_v48  ;;  %v1235_v35 = vmul.f32 %v2362_v53, %v2764_v30 }
  0xa5   : > { %v602_v4 = vsel %vm572_vm0, %v3316_v1, %v601_v20  ;;  %v1170_v18 = vrot.slane %v1111_v29, 1  ;;  %v1041_v31 = vadd.f32 %v991_v56, %v917_v46  ;;  %v3318_v21 = vrot.slane %v2664_v62, 1 }
  0xa6   : > { %v727_v38 = vsel %vm697_vm1, %v3317_v24, %v726_v0  ;;  %v640_v23 = vadd.f32 %v602_v4, %v499_v2  ;;  %v3319_v37 = vrot.slane %v2670_v3, 2  ;;  %v530_v47 = vmul.f32 %v2273_v12, %v2338_v41 }
  0xa7   : > { %v887_v52 = vsel %vm572_vm0, %v3318_v21, %v886_v28  ;;  %v3320_v44 = vrot.slane %v2692_v63, 1  ;;  %v492_v36 = vmul.f32 %v2270_v11, %v2338_v41  ;;  %v2797_v62 = vmul.f32 %v2273_v12, %v2356_v50 }
  0xa8   : > { %v1011_v45 = vsel %vm697_vm1, %v3319_v37, %v1010_v39  ;;  %v765_v2 = vadd.f32 %v727_v38, %v640_v23  ;;  %v1077_v56 = vadd.f32 %v1061_v19, %v1041_v31  ;;  %v583_v43 = vrot.slane %v530_v47, 1 }
  0xa9   : > { %v1171_v9 = vsel %vm572_vm0, %v3320_v44, %v1170_v18  ;;  %v655_v3 = vmul.f32 %v2276_v13, %v2338_v41  ;;  %v2803_v20 = vmul.f32 %v2276_v13, %v2356_v50  ;;  %v1294_v63 = vrot.slane %v1235_v35, 2 }
  0xaa   : > { %v801_v0 = vadd.f32 %v785_v42, %v765_v2  ;;  %v584_v32 = vrot.slane %v2797_v62, 1  ;;  %v778_v25 = vmul.f32 %v2278_v14, %v2602_v10  ;;  %v1201_v28 = vadd.f32 %v1151_v8, %v1077_v56 }
  0xab   : > { %v708_v29 = vrot.slane %v655_v3, 2  ;;  %v709_v46 = vrot.slane %v2803_v20, 2  ;;  %v816_v19 = vmul.f32 %v2281_v15, %v2602_v10  ;;  %v2816_v42 = vmul.f32 %v2281_v15, %v2605_v7 }
  0xac   : > { %v925_v1 = vadd.f32 %v887_v52, %v801_v0  ;;  %v585_v41 = vsel %vm572_vm0, %v583_v43, %v584_v32  ;;  %v940_v4 = vmul.f32 %v2284_v16, %v2602_v10  ;;  %v1325_v24 = vadd.f32 %v1275_v51, %v1201_v28 }
  0xad   : > { %v633_v8 = vadd.f32 %v585_v41, %v492_v36  ;;  %v710_v38 = vsel %vm697_vm1, %v708_v29, %v709_v46  ;;  %v868_v39 = vrot.slane %v816_v19, 1  ;;  %v869_v18 = vrot.slane %v2816_v42, 1 }
  0xae   : > { %v1049_v23 = vadd.f32 %v1011_v45, %v925_v1  ;;  %v2826_v35 = vmul.f32 %v2284_v16, %v2605_v7  ;;  %v992_v31 = vrot.slane %v940_v4, 2  ;;  %1800 = vmatmul.mubr.f32.gmra.mxu0 %v1325_v24  ;;  %v1295_v21 = vsel %vm697_vm1, %v1292_v34, %v1294_v63 }
  0xaf   : > { %v758_v51 = vadd.f32 %v710_v38, %v633_v8  ;;  %v1100_v52 = vmul.f32 %v2353_v49, %v2365_v54  ;;  %v2835_v37 = vmul.f32 %v2353_v49, %v2368_v55  ;;  %v870_v47 = vsel %vm572_vm0, %v868_v39, %v869_v18 }
  0xb0   : > { %v1085_v45 = vadd.f32 %v1069_v22, %v1049_v23  ;;  %v993_v2 = vrot.slane %v2826_v35, 2  ;;  %v1224_v58 = vmul.f32 %v2362_v53, %v2365_v54  ;;  %v2846_v56 = vmul.f32 %v2362_v53, %v2368_v55 }
  0xb1   : > { %v794_v44 = vadd.f32 %v778_v25, %v758_v51  ;;  %v1152_v34 = vrot.slane %v1100_v52, 1  ;;  %v1153_v36 = vrot.slane %v2835_v37, 1  ;;  %v1062_v3 = vmul.f32 %v2335_v40, %v2365_v54 }
  0xb2   : > { %v1209_v43 = vadd.f32 %v1171_v9, %v1085_v45  ;;  %v994_v22 = vsel %vm697_vm1, %v992_v31, %v993_v2  ;;  %v1276_v0 = vrot.slane %v1224_v58, 2  ;;  %v3309_v28 = vrot.slane %v2846_v56, 2 }
  0xb3   : > { %v918_v63 = vadd.f32 %v870_v47, %v794_v44  ;;  %v500_v25 = vmul.f32 %v2270_v11, %v2449_v57  ;;  %v542_v29 = vmul.f32 %v2273_v12, %v2449_v57  ;;  %v2860_v9 = vmul.f32 %v2273_v12, %v2452_v59 }
  0xb4   : > { %v1333_v19 = vadd.f32 %v1295_v21, %v1209_v43  ;;  %v667_v1 = vmul.f32 %v2276_v13, %v2449_v57  ;;  %v2866_v41 = vmul.f32 %v2276_v13, %v2452_v59  ;;  %v1154_v24 = vsel %vm572_vm0, %v1152_v34, %v1153_v36 }
  0xb5   : > { %v1042_v4 = vadd.f32 %v994_v22, %v918_v63  ;;  %v1278_v8 = vsel %vm697_vm1, %v1276_v0, %v3309_v28  ;;  %v603_v38 = vrot.slane %v542_v29, 1  ;;  %v3305_v39 = vrot.slane %v2860_v9, 1  ;;  %v2897_v22 = vld [vmem:[%s2162_s29 + $0xc0] sm:$0xff] }
  0xb6   : > { %1812 = vmatmul.mubr.f32.gmra.mxu1 %v1333_v19  ;;  %v728_v57 = vrot.slane %v667_v1, 2  ;;  %v3304_v23 = vrot.slane %v2866_v41, 2  ;;  %v828_v31 = vmul.f32 %v2281_v15, %v2681_v6  ;;  %v2880_v51 = vmul.f32 %v2281_v15, %v2684_v48 }
  0xb7   : > { %v1078_v21 = vadd.f32 %v1062_v3, %v1042_v4  ;;  %v952_v52 = vmul.f32 %v2284_v16, %v2681_v6  ;;  %v2886_v45 = vmul.f32 %v2284_v16, %v2684_v48  ;;  %v605_v47 = vsel %vm572_vm0, %v603_v38, %v3305_v39  ;;  %v2900_v3 = vld [vmem:[%s2162_s29 + $0xc8] sm:$0xff] }
  0xb8   : > { %v730_v58 = vsel %vm697_vm1, %v728_v57, %v3304_v23  ;;  %v786_v44 = vmul.f32 %v2278_v14, %v2681_v6  ;;  %v888_v34 = vrot.slane %v828_v31, 1  ;;  %v641_v0 = vadd.f32 %v605_v47, %v500_v25 }
  0xb9   : > { %v1202_v43 = vadd.f32 %v1154_v24, %v1078_v21  ;;  %v3308_v63 = vrot.slane %v2880_v51, 1  ;;  %v1012_v29 = vrot.slane %v952_v52, 2  ;;  %v3307_v19 = vrot.slane %v2886_v45, 2 }
  0xba   : > { %v1112_v1 = vmul.f32 %v2353_v49, %v2897_v22  ;;  %v2908_v4 = vmul.f32 %v2353_v49, %v2900_v3  ;;  %v1236_v24 = vmul.f32 %v2362_v53, %v2897_v22  ;;  %v766_v57 = vadd.f32 %v730_v58, %v641_v0 }
  0xbb   : > { %v1326_v38 = vadd.f32 %v1278_v8, %v1202_v43  ;;  %v1070_v25 = vmul.f32 %v2335_v40, %v2897_v22  ;;  %v2916_v31 = vmul.f32 %v2362_v53, %v2900_v3  ;;  %v890_v21 = vsel %vm572_vm0, %v888_v34, %v3308_v63 }
  0xbc   : > { %v1172_v52 = vrot.slane %v1112_v1, 1  ;;  %v3306_v47 = vrot.slane %v2908_v4, 1  ;;  %v1296_v23 = vrot.slane %v1236_v24, 2  ;;  %v802_v39 = vadd.f32 %v786_v44, %v766_v57 }
  0xbd   : > { %1802 = vmatprep.mubr.f32.mxu0 %v1326_v38  ;;  %v1014_v8 = vsel %vm697_vm1, %v1012_v29, %v3307_v19  ;;  %v1297_v58 = vrot.slane %v2916_v31, 2  ;;  %v532_v43 = vmul.f32 %v2273_v12, %v2492_v60  ;;  %v493_v34 = vmul.f32 %v2270_v11, %v2356_v50 }
  0xbe   : > { %v1174_v0 = vsel %vm572_vm0, %v1172_v52, %v3306_v47  ;;  %v657_v1 = vmul.f32 %v2276_v13, %v2492_v60  ;;  %v818_v44 = vmul.f32 %v2281_v15, %v2722_v5  ;;  %v926_v24 = vadd.f32 %v890_v21, %v802_v39 }
  0xbf   : > { %v586_v29 = vrot.slane %v532_v43, 1  ;;  %v779_v38 = vmul.f32 %v2278_v14, %v2605_v7  ;;  %v942_v57 = vmul.f32 %v2284_v16, %v2722_v5  ;;  %v1298_v52 = vsel %vm697_vm1, %v1296_v23, %v1297_v58 }
  0xc0   : > { %v711_v47 = vrot.slane %v657_v1, 2  ;;  %v871_v50 = vrot.slane %v818_v44, 1  ;;  %v1102_v60 = vmul.f32 %v2353_v49, %v2509_v26  ;;  %v1050_v19 = vadd.f32 %v1014_v8, %v926_v24 }
  0xc1   : > { %v587_v39 = vsel %vm572_vm0, %v584_v32, %v586_v29  ;;  %v995_v21 = vrot.slane %v942_v57, 2  ;;  %v1226_v43 = vmul.f32 %v2362_v53, %v2509_v26  ;;  %v1063_v23 = vmul.f32 %v2335_v40, %v2368_v55 }
  0xc2   : > { %v634_v63 = vadd.f32 %v587_v39, %v493_v34  ;;  %v712_v28 = vsel %vm697_vm1, %v709_v46, %v711_v47  ;;  %v1155_v1 = vrot.slane %v1102_v60, 1  ;;  %v1086_v44 = vadd.f32 %v1070_v25, %v1050_v19 }
  0xc3   : > { %v872_v62 = vsel %vm572_vm0, %v869_v18, %v871_v50  ;;  %v996_v32 = vsel %vm697_vm1, %v993_v2, %v995_v21  ;;  %v1279_v8 = vrot.slane %v1226_v43, 2  ;;  %v501_v20 = vmul.f32 %v2270_v11, %v2452_v59  ;;  %v2977_v59 = vld [vmem:[%s2162_s29 + $0xd0] sm:$0x3] }
  0xc4   : > { %v759_v34 = vadd.f32 %v712_v28, %v634_v63  ;;  %v544_v46 = vmul.f32 %v2273_v12, %v2539_v61  ;;  %v669_v47 = vmul.f32 %v2276_v13, %v2539_v61  ;;  %v1210_v19 = vadd.f32 %v1174_v0, %v1086_v44 }
  0xc5   : > { %v1156_v42 = vsel %vm572_vm0, %v1153_v36, %v1155_v1  ;;  %v3321_v18 = vrot.slane %v2846_v56, 2  ;;  %v830_v2 = vmul.f32 %v2281_v15, %v2764_v30  ;;  %v954_v61 = vmul.f32 %v2284_v16, %v2764_v30 }
  0xc6   : > { %v795_v28 = vadd.f32 %v779_v38, %v759_v34  ;;  %v606_v63 = vrot.slane %v544_v46, 1  ;;  %v731_v25 = vrot.slane %v669_v47, 2  ;;  %v1334_v0 = vadd.f32 %v1298_v52, %v1210_v19 }
  0xc7   : > { %v1280_v35 = vsel %vm697_vm1, %v3321_v18, %v1279_v8  ;;  %v787_v37 = vmul.f32 %v2278_v14, %v2684_v48  ;;  %v891_v36 = vrot.slane %v830_v2, 1  ;;  %v1114_v56 = vmul.f32 %v2353_v49, %v2977_v59 }
  0xc8   : > { %v919_v24 = vadd.f32 %v872_v62, %v795_v28  ;;  %v3322_v29 = vrot.slane %v2860_v9, 1  ;;  %v3323_v57 = vrot.slane %v2866_v41, 2  ;;  %v1015_v60 = vrot.slane %v954_v61, 2  ;;  %1814 = vmatprep.mubr.f32.mxu1 %v1334_v0 }
  0xc9   : > { %v1071_v52 = vmul.f32 %v2335_v40, %v2900_v3  ;;  %v1175_v21 = vrot.slane %v1114_v56, 1  ;;  %v1238_v43 = vmul.f32 %v2362_v53, %v2977_v59  ;;  %v3324_v44 = vrot.slane %v2880_v51, 1 }
  0xca   : > { %v607_v38 = vsel %vm572_vm0, %v3322_v29, %v606_v63  ;;  %v732_v50 = vsel %vm697_vm1, %v3323_v57, %v731_v25  ;;  %v1043_v1 = vadd.f32 %v996_v32, %v919_v24  ;;  %v3325_v62 = vrot.slane %v2886_v45, 2 }
  0xcb   : > { %v642_v39 = vadd.f32 %v607_v38, %v501_v20  ;;  %v892_v9 = vsel %vm572_vm0, %v3324_v44, %v891_v36  ;;  %v533_v8 = vmul.f32 %v2273_v12, %v2602_v10  ;;  %v3326_v20 = vrot.slane %v2908_v4, 1 }
  0xcc   : > { %v1016_v41 = vsel %vm697_vm1, %v3325_v62, %v1015_v60  ;;  %v494_v47 = vmul.f32 %v2270_v11, %v2602_v10  ;;  %v3010_v51 = vmul.f32 %v2273_v12, %v2605_v7  ;;  %v1079_v32 = vadd.f32 %v1063_v23, %v1043_v1 }
  0xcd   : > { %v767_v34 = vadd.f32 %v732_v50, %v642_v39  ;;  %v1176_v46 = vsel %vm572_vm0, %v3326_v20, %v1175_v21  ;;  %v588_v19 = vrot.slane %v533_v8, 1  ;;  %v658_v45 = vmul.f32 %v2276_v13, %v2602_v10 }
  0xce   : > { %v3016_v18 = vmul.f32 %v2276_v13, %v2605_v7  ;;  %v1299_v4 = vrot.slane %v1238_v43, 2  ;;  %v589_v28 = vrot.slane %v3010_v51, 1  ;;  %v780_v63 = vmul.f32 %v2278_v14, %v2365_v54 }
  0xcf   : > { %v803_v2 = vadd.f32 %v787_v37, %v767_v34  ;;  %v1203_v25 = vadd.f32 %v1156_v42, %v1079_v32  ;;  %v713_v61 = vrot.slane %v658_v45, 2  ;;  %v819_v23 = vmul.f32 %v2281_v15, %v2365_v54 }
  0xd0   : > { %v714_v0 = vrot.slane %v3016_v18, 2  ;;  %v590_v10 = vsel %vm572_vm0, %v588_v19, %v589_v28  ;;  %v3029_v37 = vmul.f32 %v2281_v15, %v2368_v55  ;;  %v943_v56 = vmul.f32 %v2284_v16, %v2365_v54 }
  0xd1   : > { %v927_v36 = vadd.f32 %v892_v9, %v803_v2  ;;  %v1327_v24 = vadd.f32 %v1280_v35, %v1203_v25  ;;  %v635_v42 = vadd.f32 %v590_v10, %v494_v47  ;;  %v873_v38 = vrot.slane %v819_v23, 1 }
  0xd2   : > { %v715_v29 = vsel %vm697_vm1, %v713_v61, %v714_v0  ;;  %v874_v50 = vrot.slane %v3029_v37, 1  ;;  %v3039_v60 = vmul.f32 %v2284_v16, %v2368_v55  ;;  %v997_v39 = vrot.slane %v943_v56, 2 }
  0xd3   : > { %v1051_v57 = vadd.f32 %v1016_v41, %v927_v36  ;;  %1803 = vmatmul.mubr.f32.gmra.mxu0 %v1327_v24  ;;  %v1300_v54 = vsel %vm697_vm1, %v1297_v58, %v1299_v4  ;;  %v760_v35 = vadd.f32 %v715_v29, %v635_v42  ;;  %v1103_v21 = vmul.f32 %v2353_v49, %v2407_v17  ;;  %v478_v24 = vld [vmem:[%s2162_s29 + $0xd8] sm:$0xff]  ;;  %v3093_v42 = vld [vmem:[%s2162_s29 + $0xe0] sm:$0xff] }
  0xd4   : > { %v3048_v43 = vmul.f32 %v2353_v49, %v2418_v27  ;;  %v875_v55 = vsel %vm572_vm0, %v873_v38, %v874_v50  ;;  %v998_v44 = vrot.slane %v3039_v60, 2  ;;  %v1227_v31 = vmul.f32 %v2362_v53, %v2407_v17 }
  0xd5   : > { %v1087_v1 = vadd.f32 %v1071_v52, %v1051_v57  ;;  %v796_v9 = vadd.f32 %v780_v63, %v760_v35  ;;  %v1157_v58 = vrot.slane %v1103_v21, 1  ;;  %v3059_v41 = vmul.f32 %v2362_v53, %v2418_v27 }
  0xd6   : > { %v1158_v62 = vrot.slane %v3048_v43, 1  ;;  %v999_v52 = vsel %vm697_vm1, %v997_v39, %v998_v44  ;;  %v1064_v34 = vmul.f32 %v2335_v40, %v2407_v17  ;;  %v1281_v20 = vrot.slane %v1227_v31, 2 }
  0xd7   : > { %v1211_v8 = vadd.f32 %v1176_v46, %v1087_v1  ;;  %v920_v47 = vadd.f32 %v875_v55, %v796_v9  ;;  %v1282_v32 = vrot.slane %v3059_v41, 2  ;;  %v502_v19 = vmul.f32 %v2270_v11, %v2681_v6 }
  0xd8   : > { %v545_v27 = vmul.f32 %v2273_v12, %v2681_v6  ;;  %v3073_v45 = vmul.f32 %v2273_v12, %v2684_v48  ;;  %v670_v17 = vmul.f32 %v2276_v13, %v2681_v6  ;;  %v3079_v2 = vmul.f32 %v2276_v13, %v2684_v48 }
  0xd9   : > { %v1335_v46 = vadd.f32 %v1300_v54, %v1211_v8  ;;  %v1044_v4 = vadd.f32 %v999_v52, %v920_v47  ;;  %v1159_v63 = vsel %vm572_vm0, %v1157_v58, %v1158_v62  ;;  %v1283_v25 = vsel %vm697_vm1, %v1281_v20, %v1282_v32 }
  0xda   : > { %v608_v61 = vrot.slane %v545_v27, 1  ;;  %v609_v23 = vrot.slane %v3073_v45, 1  ;;  %v733_v36 = vrot.slane %v670_v17, 2  ;;  %v734_v6 = vrot.slane %v3079_v2, 2 }
  0xdb   : > { %1815 = vmatmul.mubr.f32.gmra.mxu1 %v1335_v46  ;;  %v831_v10 = vmul.f32 %v2281_v15, %v2897_v22  ;;  %v1080_v56 = vadd.f32 %v1064_v34, %v1044_v4  ;;  %v3097_v29 = vmul.f32 %v2281_v15, %v2900_v3  ;;  %v955_v38 = vmul.f32 %v2284_v16, %v2897_v22 }
  0xdc   : > { %v3103_v57 = vmul.f32 %v2284_v16, %v2900_v3  ;;  %v610_v39 = vsel %vm572_vm0, %v608_v61, %v609_v23  ;;  %v735_v54 = vsel %vm697_vm1, %v733_v36, %v734_v6  ;;  %v788_v35 = vmul.f32 %v2278_v14, %v2897_v22 }
  0xdd   : > { %v893_v21 = vrot.slane %v831_v10, 1  ;;  %v1204_v1 = vadd.f32 %v1159_v63, %v1080_v56  ;;  %v643_v55 = vadd.f32 %v610_v39, %v502_v19  ;;  %v894_v31 = vrot.slane %v3097_v29, 1 }
  0xde   : > { %v1017_v9 = vrot.slane %v955_v38, 2  ;;  %v1018_v58 = vrot.slane %v3103_v57, 2  ;;  %v1115_v8 = vmul.f32 %v2353_v49, %v478_v24  ;;  %v3118_v52 = vmul.f32 %v2353_v49, %v3093_v42 }
  0xdf   : > { %v1239_v34 = vmul.f32 %v2362_v53, %v478_v24  ;;  %v1328_v20 = vadd.f32 %v1283_v25, %v1204_v1  ;;  %v768_v47 = vadd.f32 %v735_v54, %v643_v55  ;;  %v3123_v22 = vmul.f32 %v2362_v53, %v3093_v42 }
  0xe0   : > { %v895_v19 = vsel %vm572_vm0, %v893_v21, %v894_v31  ;;  %v1019_v27 = vsel %vm697_vm1, %v1017_v9, %v1018_v58  ;;  %v1072_v46 = vmul.f32 %v2335_v40, %v478_v24  ;;  %v1177_v4 = vrot.slane %v1115_v8, 1  ;;  %v1925_v8 = vld [vmem:[%s2162_s29 + $0x68] sm:$0xff] }
  0xe1   : > { %1805 = vmatprep.mubr.f32.mxu0 %v1328_v20  ;;  %v804_v17 = vadd.f32 %v788_v35, %v768_v47  ;;  %v1178_v63 = vrot.slane %v3118_v52, 1  ;;  %v535_v25 = vmul.f32 %v2273_v12, %v2722_v5  ;;  %v1301_v61 = vrot.slane %v1239_v34, 2 }
  0xe2   : > { %v495_v36 = vmul.f32 %v2270_v11, %v2605_v7  ;;  %v660_v10 = vmul.f32 %v2276_v13, %v2722_v5  ;;  %v821_v56 = vmul.f32 %v2281_v15, %v2509_v26  ;;  %v1302_v38 = vrot.slane %v3123_v22, 2 }
  0xe3   : > { %v928_v24 = vadd.f32 %v895_v19, %v804_v17  ;;  %v591_v39 = vrot.slane %v535_v25, 1  ;;  %v945_v54 = vmul.f32 %v2284_v16, %v2509_v26  ;;  %v1179_v5 = vsel %vm572_vm0, %v1177_v4, %v1178_v63 }
  0xe4   : > { %v716_v35 = vrot.slane %v660_v10, 2  ;;  %v876_v7 = vrot.slane %v821_v56, 1  ;;  %v781_v34 = vmul.f32 %v1925_v8, %v2278_v14  ;;  %v1303_v51 = vsel %vm697_vm1, %v1301_v61, %v1302_v38  ;;  %v480_v10 = vld [vmem:[%s2162_s29 + $0xe8] sm:$0x3] }
  0xe5   : > { %v1052_v21 = vadd.f32 %v1019_v27, %v928_v24  ;;  %v592_v1 = vsel %vm572_vm0, %v589_v28, %v591_v39  ;;  %v1000_v20 = vrot.slane %v945_v54, 2  ;;  %v1105_v28 = vmul.f32 %v2353_v49, %v2525_v33 }
  0xe6   : > { %v636_v55 = vadd.f32 %v592_v1, %v495_v36  ;;  %v717_v9 = vsel %vm697_vm1, %v714_v0, %v716_v35  ;;  %v1229_v19 = vmul.f32 %v2362_v53, %v2525_v33  ;;  %v547_v18 = vmul.f32 %v2273_v12, %v2764_v30 }
  0xe7   : > { %v1088_v26 = vadd.f32 %v1072_v46, %v1052_v21  ;;  %v672_v0 = vmul.f32 %v2276_v13, %v2764_v30  ;;  %v877_v46 = vsel %vm572_vm0, %v874_v50, %v876_v7  ;;  %v503_v17 = vmul.f32 %v2270_v11, %v2684_v48  ;;  %v1926_v30 = vld [vmem:[%s2162_s29 + $0x80] sm:$0xff]  ;;  %s1725_s29 = sshll.u32 %s2005_s15, 4  ;;  %s3327_s15 = sand.u32 1, %s1997_s13  }
  0xe8   : > { %v761_v47 = vadd.f32 %v717_v9, %v636_v55  ;;  %v833_v4 = vmul.f32 %v2281_v15, %v2977_v59  ;;  %v611_v33 = vrot.slane %v547_v18, 1  ;;  %v957_v12 = vmul.f32 %v2284_v16, %v2977_v59  ;;  %s1528_s20 = sadd.s32 %s1726_s11, %s1725_s29  ;;  %s3239_s16 = scalar_lea.sflag [#allocation5], %s3327_s15 }
  0xe9   : > { %v1212_v27 = vadd.f32 %v1179_v5, %v1088_v26  ;;  %v736_v61 = vrot.slane %v672_v0, 2  ;;  %v1001_v13 = vsel %vm697_vm1, %v998_v44, %v1000_v20  ;;  %v1065_v37 = vmul.f32 %v1926_v30, %v2335_v40  ;;  %s1727_s21 = sshll.u32 %s1528_s20, 7 }
  0xea   : > { %v797_v25 = vadd.f32 %v781_v34, %v761_v47  ;;  %v1160_v50 = vrot.slane %v1105_v28, 1  ;;  %v612_v15 = vsel %vm572_vm0, %v609_v23, %v611_v33  ;;  %v896_v16 = vrot.slane %v833_v4, 1  ;;  %s3231_s5 = scalar_lea.hbm %s3293_s3, %s1727_s21 }
  0xeb   : > { %v1336_v36 = vadd.f32 %v1303_v51, %v1212_v27  ;;  %v737_v48 = vsel %vm697_vm1, %v734_v6, %v736_v61  ;;  %v1284_v59 = vrot.slane %v1229_v19, 2  ;;  %v644_v60 = vadd.f32 %v612_v15, %v503_v17 }
  0xec   : > { %v921_v11 = vadd.f32 %v877_v46, %v797_v25  ;;  %v789_v44 = vmul.f32 %v2278_v14, %v2900_v3  ;;  %v1020_v24 = vrot.slane %v957_v12, 2  ;;  %v1117_v39 = vmul.f32 %v2353_v49, %v480_v10 }
  0xed   : > { %1817 = vmatprep.mubr.f32.mxu1 %v1336_v36  ;;  %v1161_v45 = vsel %vm572_vm0, %v1158_v62, %v1160_v50  ;;  %v769_v23 = vadd.f32 %v737_v48, %v644_v60  ;;  %v897_v2 = vsel %vm572_vm0, %v894_v31, %v896_v16  ;;  %v1241_v6 = vmul.f32 %v2362_v53, %v480_v10 }
  0xee   : > { %v1045_v56 = vadd.f32 %v1001_v13, %v921_v11  ;;  %v1285_v14 = vsel %vm697_vm1, %v1282_v32, %v1284_v59  ;;  %v1021_v49 = vsel %vm697_vm1, %v1018_v58, %v1020_v24  ;;  %v1180_v43 = vrot.slane %v1117_v39, 1 }
  0xef   : > { %v805_v3 = vadd.f32 %v789_v44, %v769_v23  ;;  %v1073_v29 = vmul.f32 %v2335_v40, %v3093_v42  ;;  %v1304_v53 = vrot.slane %v1241_v6, 2 }
  0xf0   : > { %v1081_v54 = vadd.f32 %v1065_v37, %v1045_v56  ;;  %v1181_v32 = vsel %vm572_vm0, %v1178_v63, %v1180_v43 }
  0xf1   : > { %v929_v62 = vadd.f32 %v897_v2, %v805_v3  ;;  %v1305_v58 = vsel %vm697_vm1, %v1302_v38, %v1304_v53 }
  0xf2   : > { %v1205_v35 = vadd.f32 %v1161_v45, %v1081_v54 }
  0xf3   : > { %v1053_v41 = vadd.f32 %v1021_v49, %v929_v62 }
  0xf4   : > { %v1329_v31 = vadd.f32 %v1285_v14, %v1205_v35 }
  0xf5   : > { %v1089_v57 = vadd.f32 %v1073_v29, %v1053_v41 }
  0xf6   : > { %1806 = vmatmul.mubr.f32.gmra.mxu0 %v1329_v31 }
  0xf7   : > { %v1213_v21 = vadd.f32 %v1181_v32, %v1089_v57 }
  0xf9   : > { %v1337_v40 = vadd.f32 %v1305_v58, %v1213_v21 }
  0xfb   : > { %1818 = vmatmul.mubr.f32.gmra.mxu1 %v1337_v40 }
 0x14a   : > { %v1798_v42 = vpop.f32.mrf.mxu0 }
 0x14b   : > { %1500 = vst [vmem:[%s2120_s6 + $0x8] sm:$0xff] %v1798_v42 }
 0x14c   : > { %v1420_v1 = vpop.f32.mrf.mxu0 }
 0x14d   : > { %1499 = vst [vmem:[%s2120_s6] sm:$0xff] %v1420_v1 }
 0x151   : > { %v1810_v52 = vpop.f32.mrf.mxu1 }
 0x152   : > { %1508 = vst [vmem:[%s2120_s6 + $0x48] sm:$0xff] %v1810_v52 }
 0x153   : > { %v1460_v63 = vpop.f32.mrf.mxu1 }
 0x154   : > { %1507 = vst [vmem:[%s2120_s6 + $0x40] sm:$0xff] %v1460_v63 }
 0x16e   : > { %v1801_v22 = vpop.f32.mrf.mxu0 }
 0x16f   : > { %1502 = vst [vmem:[%s2120_s6 + $0x18] sm:$0xff] %v1801_v22 }
 0x170   : > { %v1430_v38 = vpop.f32.mrf.mxu0 }
 0x171   : > { %1501 = vst [vmem:[%s2120_s6 + $0x10] sm:$0xff] %v1430_v38 }
 0x176   : > { %v1813_v7 = vpop.f32.mrf.mxu1 }
 0x177   : > { %1510 = vst [vmem:[%s2120_s6 + $0x58] sm:$0xff] %v1813_v7 }
 0x178   : > { %v1470_v5 = vpop.f32.mrf.mxu1 }
 0x179   : > { %1509 = vst [vmem:[%s2120_s6 + $0x50] sm:$0xff] %v1470_v5 }
 0x193   : > { %v1804_v55 = vpop.f32.mrf.mxu0 }
 0x194   : > { %1504 = vst [vmem:[%s2120_s6 + $0x28] sm:$0xff] %v1804_v55 }
 0x195   : > { %v1440_v9 = vpop.f32.mrf.mxu0 }
 0x196   : > { %1503 = vst [vmem:[%s2120_s6 + $0x20] sm:$0xff] %v1440_v9 }
 0x19b   : > { %v1816_v8 = vpop.f32.mrf.mxu1 }
 0x19c   : > { %1512 = vst [vmem:[%s2120_s6 + $0x68] sm:$0xff] %v1816_v8 }
 0x19d   : > { %v1480_v34 = vpop.f32.mrf.mxu1 }
 0x19e   : > { %1511 = vst [vmem:[%s2120_s6 + $0x60] sm:$0xff] %v1480_v34 }
 0x1b6   : > { %v1807_v26 = vpop.f32.mrf.mxu0 }
 0x1b7   : > { %1506 = vst [vmem:[%s2120_s6 + $0x38] sm:$0xff] %v1807_v26 }
 0x1b8   : > { %v1450_v51 = vpop.f32.mrf.mxu0 }
 0x1b9   : > { %1505 = vst [vmem:[%s2120_s6 + $0x30] sm:$0xff] %v1450_v51 }
 0x1bb   : > { %v1819_v20 = vpop.f32.mrf.mxu1 }
 0x1bc   : > { %1514 = vst [vmem:[%s2120_s6 + $0x78] sm:$0xff] %v1819_v20 }
 0x1bd   : > { %v1490_v28 = vpop.f32.mrf.mxu1 }
 0x1be   : > { %1513 = vst [vmem:[%s2120_s6 + $0x70] sm:$0xff] %v1490_v28 }
 0x1bf   : > { %1940 = shalt.err (!%p1937_p12)
}
 0x1c0   : > { %s1941_s6 = scalar_lea.hbm %s3231_s5, 2048  ;;  %s1945_s11 = scalar_lea.hbm %s3293_s3, 8192 }
 0x1c1   : > { %p1942_p13 = scmp.ne.s32.totalorder %s3231_s5, %s1941_s6  ;;  %p1946_p2 = scmp.lt.s32.totalorder %s3231_s5, %s3293_s3 }
 0x1c2   : > { %p1947_p4 = scmp.lt.s32.totalorder %s1945_s11, %s1941_s6 }
 0x1c3   : > { %p1943_p0 = pnand %p1942_p13, %p2097_p3 }
 0x1c4   : > { %p1948_p5 = por %p1947_p4, %p1946_p2 }
 0x1c5   : > { %p1944_p1 = pneg %p1943_p0 }
 0x1c7   : > { %p1949_p6 = pnand %p1948_p5, %p1944_p1 }
 0x1c9   : > { %1952 = shalt.err (!%p1949_p6)
}
 0x1ca   : > { %s2024_s28 = smov 128   ;;  %s2025_s27 = smov 8  }
 0x1cb   : > { %1852 = dma.vmem_to_hbm [thread:$0]  (%p2097_p3), %s3233_s24, 2048, %s3231_s5, %s3239_s16, %s2024_s28, %s2024_s28, %s2025_s27  }
 0x1cc PF: > { %p1858_p7 = scmp.ge.s32.totalorder %s2021_s19, 2  ;;  %s1546_s15 = sand.u32 1, %s1993_s12  }
 0x1cd   : > { %s1547_s4 = scalar_lea.sflag [#allocation5], %s1546_s15 }
 0x1ce   : > { %p1855_p9 = pnand %p1858_p7, %p2106_p8 }
 0x1d0   : > { %p1856_p10 = pneg %p1855_p9 }
 0x1d2   : > { %1988 = dma.done.wait (%p1856_p10), %s1547_s4, 2048  }
 0x1d3   : > { %1990 = vsyncadd (%p1856_p10), %s1547_s4, 4294965248  ;;  %s16_s19 = sadd.s32 1, %s2021_s19   ;;  %s3328_s12 = smov %s1997_s13 }
 0x1d4   : > { %p13_p11 = scmp.ge.s32.totalorder %s16_s19, 6   ;;  %s3329_s13 = smov %s2001_s14 }
 0x1d5   : > { %s3330_s14 = smov %s2115_s30  ;;  %s3331_s15 = smov %s2013_s17 }
 0x1d6   : > { %s3332_s16 = smov %s2017_s18  ;;  %s3333_s17 = smov %s3336_s22 }
 0x1d7   : > { %s3334_s18 = smov %s3340_s23  ;;  %15 = sbr.rel (!%p13_p11) target bundleno = 5 (0x5), region = 177 }
 0x1dc   :  { %1552 = vsyncpa [#allocation5], 1 }
 0x1dd   :  { %1554 = vsyncpa [#allocation5 + $0x1], 1 }
 0x1de   :  { %1555 = vsyncmov [#allocation3] }
 0x1e1   :  { %s1556_s25 = vpop.sfrf %1555 }
 0x1e2   :  { %p1730_p3 = scmp.ne.s32.totalorder %s1556_s25, 0 }
 0x1e4   :  { %1560 = shalt.err (%p1730_p3)  }
 0x1e5   :  { %1562 = vsyncmov [#allocation3 + $0x1] }
 0x1e8   :  { %s1563_s26 = vpop.sfrf %1562 }
 0x1e9   :  { %p1731_p8 = scmp.ne.s32.totalorder %s1563_s26, 0 }
 0x1eb   :  { %1567 = shalt.err (%p1731_p8)  }

</bundles_post_ra>
